<compile_context>
chip_gen: v7x
topology: tpu7x:2x2x1
jax: 0.10.0
libtpu: 0.0.40
codegen_flags: <defaults>
</compile_context>

<pallas_src>
import jax
import jax.numpy as jnp
from jax.experimental import pallas as pl
from jax.experimental.pallas import tpu as pltpu


def se_fused_kernel(w1_ref, b1_ref, v_ref, x_ref, w2_ref, o_ref):
    # gate = sigmoid(v @ W1 + b1)  -> [1, Cmid]   (f32 bias/sigmoid path: v5e-safe)
    s = jnp.dot(v_ref[...], w1_ref[...], preferred_element_type=jnp.float32)
    gate = jax.nn.sigmoid(s + b1_ref[...])
    # y = gate * X  (gate broadcasts over the HW sublane rows)  -> [HW, Cmid]
    y = (gate * x_ref[...].astype(jnp.float32)).astype(jnp.bfloat16)
    # out = y @ W2  -> [HW, Cout]  lane-dense f32 output (unmasked stores)
    o_ref[...] = jnp.dot(y, w2_ref[...], preferred_element_type=jnp.float32)


def m_forward(x516, x513, w1, b1, w2):
    """Forward pass of module M. Batch size 1, as in the reference module."""
    n, cin, _, _ = x516.shape
    _, cmid, h, w = x513.shape
    cout = w2.shape[0]
    hw = h * w
    # TODO(synk): for N>1, fold batch into the row (sublane) axis with a per-batch gate.
    assert n == 1, "kernel specialized to batch=1 (as in the module spec)"

    # Wrapper-side layout plumbing: put channels on the lane axis, MXU operands in bf16.
    # (In a real model the weights would already be stored bf16 / pre-transposed.)
    v = x516.reshape(1, cin).astype(jnp.bfloat16)                     # [1, Cin]
    x2d = jnp.transpose(x513.reshape(cmid, hw)).astype(jnp.bfloat16)  # [HW, Cmid]
    w1m = jnp.transpose(w1.reshape(cmid, cin)).astype(jnp.bfloat16)   # [Cin, Cmid]
    b1v = b1.reshape(1, cmid).astype(jnp.float32)                     # [1, Cmid]
    w2m = jnp.transpose(w2.reshape(cout, cmid)).astype(jnp.bfloat16)  # [Cmid, Cout]

    flops = 2 * cin * cmid + 2 * hw * cmid * cout                     # ~38.7 MFLOP
    bytes_accessed = (w1m.size * 2 + b1v.size * 4 + v.size * 2 +
                      x2d.size * 2 + w2m.size * 2 + hw * cout * 4)    # ~1.2 MiB

    # Total residency ~1.2 MiB << scoped VMEM on all generations -> single
    # whole-array block, no grid (grid would only add per-step overhead here).
    vmem = pl.BlockSpec(memory_space=pltpu.MemorySpace.VMEM)
    out2d = pl.pallas_call(
        se_fused_kernel,
        out_shape=jax.ShapeDtypeStruct((hw, cout), jnp.float32),
        in_specs=[vmem, vmem, vmem, vmem, vmem],
        out_specs=vmem,
        cost_estimate=pl.CostEstimate(
            flops=flops, transcendentals=cmid, bytes_accessed=bytes_accessed),
    )(w1m, b1v, v, x2d, w2m)

    return jnp.transpose(out2d).reshape(1, cout, h, w)


if __name__ == "__main__":
    key = jax.random.PRNGKey(0)
    k1, k2, k3, k4, k5 = jax.random.split(key, 5)

    N, CIN, CMID, COUT, H, W = 1, 64, 1536, 256, 7, 7

    # Inputs (match module's tensor shapes).
    x516 = jax.random.normal(k1, (N, CIN, 1, 1), dtype=jnp.float32)
    x513 = jax.random.normal(k2, (N, CMID, H, W), dtype=jnp.float32)

    # Deterministic parameter init (synthetic, roughly PyTorch-Conv2d-scaled).
    bound1 = 1.0 / (CIN ** 0.5)
    w1 = jax.random.uniform(k3, (CMID, CIN, 1, 1), jnp.float32, -bound1, bound1)
    b1 = jax.random.uniform(k4, (CMID,), jnp.float32, -bound1, bound1)
    bound2 = 1.0 / (CMID ** 0.5)
    w2 = jax.random.uniform(k5, (COUT, CMID, 1, 1), jnp.float32, -bound2, bound2)

    out = jax.block_until_ready(m_forward(x516, x513, w1, b1, w2))

    # Pure-JAX reference using the same bf16 rounding of the MXU operands and
    # f32 accumulation (matches the kernel's numerics).
    def bf(x):
        return x.astype(jnp.bfloat16).astype(jnp.float32)

    gate = jax.nn.sigmoid(
        jnp.einsum("oc,c->o", bf(w1.reshape(CMID, CIN)), bf(x516.reshape(CIN))) + b1
    )
    y = gate[None, :, None, None] * bf(x513)
    y = y.astype(jnp.bfloat16).astype(jnp.float32)
    ref = jnp.einsum("oc,nchw->nohw", bf(w2.reshape(COUT, CMID)), y)

    assert out.shape == (N, COUT, H, W), out.shape
    assert jnp.allclose(out, ref, atol=1e-2, rtol=1e-2), "mismatch vs reference"
    print("KERNEL_OK")
</pallas_src>

<mosaic_0001>
module attributes {stable_mosaic.version = 11 : i64} {
  func.func @se_fused_kernel(%arg0: memref<64x1536xbf16, #tpu.memory_space<vmem>>, %arg1: memref<1x1536xf32, #tpu.memory_space<vmem>>, %arg2: memref<1x64xbf16, #tpu.memory_space<vmem>>, %arg3: memref<49x1536xbf16, #tpu.memory_space<vmem>>, %arg4: memref<1536x256xbf16, #tpu.memory_space<vmem>>, %arg5: memref<49x256xf32, #tpu.memory_space<vmem>>) attributes {dimension_semantics = [], scalar_prefetch = 0 : i64, scratch_operands = 0 : i64, tpu.core_type = #tpu.core_type<tc>} {
    %c0 = arith.constant 0 : index
    %c0_0 = arith.constant 0 : index
    %0 = vector.load %arg2[%c0, %c0_0] : memref<1x64xbf16, #tpu.memory_space<vmem>>, vector<1x64xbf16>
    %c0_1 = arith.constant 0 : index
    %c0_2 = arith.constant 0 : index
    %1 = vector.load %arg0[%c0_1, %c0_2] : memref<64x1536xbf16, #tpu.memory_space<vmem>>, vector<64x1536xbf16>
    %cst = arith.constant dense<0.000000e+00> : vector<1x1536xf32>
    %2 = tpu.matmul %0, %1, %cst {dimension_numbers = #tpu.dot_dimension_numbers<[1], [0], [0], [1], [0, 0, 1, 1], [], []>} : vector<1x64xbf16>, vector<64x1536xbf16>, vector<1x1536xf32> -> vector<1x1536xf32>
    %c0_3 = arith.constant 0 : index
    %c0_4 = arith.constant 0 : index
    %3 = vector.load %arg1[%c0_3, %c0_4] : memref<1x1536xf32, #tpu.memory_space<vmem>>, vector<1x1536xf32>
    %4 = arith.addf %2, %3 : vector<1x1536xf32>
    %5 = arith.negf %4 : vector<1x1536xf32>
    %6 = math.exp %5 : vector<1x1536xf32>
    %cst_5 = arith.constant 1.000000e+00 : f32
    %7 = vector.broadcast %cst_5 : f32 to vector<1x1536xf32>
    %8 = arith.addf %7, %6 : vector<1x1536xf32>
    %9 = arith.divf %7, %8 : vector<1x1536xf32>
    %c0_6 = arith.constant 0 : index
    %c0_7 = arith.constant 0 : index
    %10 = vector.load %arg3[%c0_6, %c0_7] : memref<49x1536xbf16, #tpu.memory_space<vmem>>, vector<49x1536xbf16>
    %11 = arith.extf %10 : vector<49x1536xbf16> to vector<49x1536xf32>
    %12 = vector.broadcast %9 : vector<1x1536xf32> to vector<49x1536xf32>
    %13 = arith.mulf %12, %11 : vector<49x1536xf32>
    %14 = arith.truncf %13 : vector<49x1536xf32> to vector<49x1536xbf16>
    %c0_8 = arith.constant 0 : index
    %c0_9 = arith.constant 0 : index
    %15 = vector.load %arg4[%c0_8, %c0_9] : memref<1536x256xbf16, #tpu.memory_space<vmem>>, vector<1536x256xbf16>
    %cst_10 = arith.constant dense<0.000000e+00> : vector<49x256xf32>
    %16 = tpu.matmul %14, %15, %cst_10 {dimension_numbers = #tpu.dot_dimension_numbers<[1], [0], [0], [1], [0, 0, 1, 1], [], []>} : vector<49x1536xbf16>, vector<1536x256xbf16>, vector<49x256xf32> -> vector<49x256xf32>
    %c0_11 = arith.constant 0 : index
    %c0_12 = arith.constant 0 : index
    %17 = vector.load %arg5[%c0_11, %c0_12] : memref<49x256xf32, #tpu.memory_space<vmem>>, vector<49x256xf32>
    tpu.vector_store %arg5[%c0_11, %c0_12], %16 {strides = array<i32>} : memref<49x256xf32, #tpu.memory_space<vmem>>, vector<49x256xf32>,
    return
  }
}

</mosaic_0001>

<bundles_post_ra>
// kernel: tpu_custom_call.1
= control target key start
LH: loop header
LB: loop body
LE: loop exit
PB: predicated region body
PF: predicated region fallthrough
CT: control target
= control target key end

     0   :  { %10 = vsyncpa [#allocation3], 0  ;;  %s3943_s0 = inlined_call_operand.hbm [shape: bf16[64,1536], index: 0, kind: input, shape index: {}]   ;;  %s3944_s1 = inlined_call_operand.hbm [shape: f32[1,1536], index: 1, kind: input, shape index: {}]   ;;  %s3945_s2 = inlined_call_operand.vmem [shape: bf16[1,64], index: 2, kind: input, shape index: {}]   ;;  %s3946_s3 = inlined_call_operand.hbm [shape: bf16[49,1536], index: 3, kind: input, shape index: {}]   ;;  %s3947_s4 = inlined_call_operand.hbm [shape: bf16[1536,256], index: 4, kind: input, shape index: {}]   ;;  %s3948_s5 = inlined_call_operand.hbm [shape: f32[49,256], index: 5, kind: output, shape index: {}]  }
   0x1   :  { %11 = vsyncpa [#allocation6], 0 }
   0x2   :  { %12 = vsyncpa [#allocation9], 0 }
   0x3   :  { %13 = vsyncpa [#allocation4], 0  ;;  %s3541_s18 = smov [#allocation5]   ;;  %s3542_s20 = smov [#allocation2]  }
   0x4   :  { %s32_s19 = sshll.u32 %s3541_s18, 4  ;;  %s19_s21 = sshll.u32 %s3542_s20, 4  ;;  %s33_s19 = int_to_ptr.vmem [resolvable:$true] %s32_s19  ;;  %s3583_s21 = int_to_ptr.vmem [resolvable:$true] %s19_s21 }
   0x5   :  { %s3423_s24 = scalar_lea.hbm %s3944_s1, 192 }
   0x6   :  { %p3424_p0 = scmp.ne.s32.totalorder %s3944_s1, %s3423_s24  ;;  %p3427_p1 = scmp.lt.u32.totalorder %s3423_s24, %s3944_s1 }
   0x8   :  { %p3429_p2 = pnand %p3427_p1, %p3424_p0 }
   0xa   :  { %3432 = shalt.err (!%p3429_p2)
}
   0xb   :  { %s3433_s29 = scalar_lea.vmem %s33_s19, 192  ;;  %p3438_p4 = scmp.lt.s32.totalorder %s33_s19, %s33_s19 }
   0xc   :  { %p3434_p3 = scmp.ne.s32.totalorder %s33_s19, %s3433_s29  ;;  %p3439_p5 = scmp.lt.s32.totalorder %s3433_s29, %s3433_s29 }
   0xe   :  { %p3440_p6 = por %p3439_p5, %p3438_p4 }
  0x10   :  { %p3441_p7 = pnand %p3440_p6, %p3434_p3 }
  0x12   :  { %3444 = shalt.err (!%p3441_p7)
}
  0x13   :  { %35 = dma.hbm_to_vmem [thread:$0]  %s3944_s1, 192, %s33_s19, [#allocation6]  }
  0x14   :  { %s3445_s9 = scalar_lea.hbm %s3943_s0, 6144 }
  0x15   :  { %p3446_p8 = scmp.ne.s32.totalorder %s3943_s0, %s3445_s9  ;;  %p3449_p9 = scmp.lt.u32.totalorder %s3445_s9, %s3943_s0 }
  0x17   :  { %p3451_p10 = pnand %p3449_p9, %p3446_p8 }
  0x19   :  { %3454 = shalt.err (!%p3451_p10)
}
  0x1a   :  { %s3455_s14 = scalar_lea.vmem %s3583_s21, 6144  ;;  %p3460_p12 = scmp.lt.s32.totalorder %s3583_s21, %s3583_s21 }
  0x1b   :  { %p3456_p11 = scmp.ne.s32.totalorder %s3583_s21, %s3455_s14  ;;  %p3461_p13 = scmp.lt.s32.totalorder %s3455_s14, %s3455_s14 }
  0x1d   :  { %p3462_p0 = por %p3461_p13, %p3460_p12 }
  0x1f   :  { %p3463_p1 = pnand %p3462_p0, %p3456_p11 }
  0x21   :  { %3466 = shalt.err (!%p3463_p1)
}
  0x22   :  { %s3543_s1 = smov 768   ;;  %s3544_s15 = smov 48  }
  0x23   :  { %25 = dma.hbm_to_vmem [thread:$0]  %s3943_s0, 6144, %s3583_s21, [#allocation3], %s3543_s1, %s3543_s1, %s3544_s15  }
  0x24   :  { %s3545_s18 = smov [#allocation7]   ;;  %s3546_s20 = smov [#allocation8]  }
  0x25   :  { %s43_s19 = sshll.u32 %s3545_s18, 4  ;;  %s55_s22 = sshll.u32 %s3546_s20, 4  ;;  %s44_s19 = int_to_ptr.vmem [resolvable:$true] %s43_s19  ;;  %s3614_s22 = int_to_ptr.vmem [resolvable:$true] %s55_s22 }
  0x26   :  { %s3467_s25 = scalar_lea.hbm %s3946_s3, 5376 }
  0x27   :  { %p3468_p2 = scmp.ne.s32.totalorder %s3946_s3, %s3467_s25  ;;  %p3471_p3 = scmp.lt.u32.totalorder %s3467_s25, %s3946_s3 }
  0x29   :  { %p3473_p4 = pnand %p3471_p3, %p3468_p2 }
  0x2b   :  { %3476 = shalt.err (!%p3473_p4)
}
  0x2c   :  { %s3477_s0 = scalar_lea.vmem %s44_s19, 5376  ;;  %p3482_p6 = scmp.lt.s32.totalorder %s44_s19, %s44_s19 }
  0x2d   :  { %p3478_p5 = scmp.ne.s32.totalorder %s44_s19, %s3477_s0  ;;  %p3483_p7 = scmp.lt.s32.totalorder %s3477_s0, %s3477_s0 }
  0x2f   :  { %p3484_p8 = por %p3483_p7, %p3482_p6 }
  0x31   :  { %p3485_p9 = pnand %p3484_p8, %p3478_p5 }
  0x33   :  { %3488 = shalt.err (!%p3485_p9)
}
  0x34   :  { %49 = dma.hbm_to_vmem [thread:$0]  %s3946_s3, 5376, %s44_s19, [#allocation6], %s3543_s1, %s3543_s1, %s3544_s15  }
  0x35   :  { %s3489_s8 = scalar_lea.hbm %s3947_s4, 24576 }
  0x36   :  { %p3490_p10 = scmp.ne.s32.totalorder %s3947_s4, %s3489_s8  ;;  %p3493_p11 = scmp.lt.u32.totalorder %s3489_s8, %s3947_s4 }
  0x38   :  { %p3495_p12 = pnand %p3493_p11, %p3490_p10 }
  0x3a   :  { %3498 = shalt.err (!%p3495_p12)
}
  0x3b   :  { %s3499_s13 = scalar_lea.vmem %s3614_s22, 24576  ;;  %p3504_p0 = scmp.lt.s32.totalorder %s3614_s22, %s3614_s22 }
  0x3c   :  { %p3500_p13 = scmp.ne.s32.totalorder %s3614_s22, %s3499_s13  ;;  %p3505_p1 = scmp.lt.s32.totalorder %s3499_s13, %s3499_s13 }
  0x3e   :  { %p3506_p2 = por %p3505_p1, %p3504_p0 }
  0x40   :  { %p3507_p3 = pnand %p3506_p2, %p3500_p13 }
  0x42   :  { %3510 = shalt.err (!%p3507_p3)
}
  0x43   :  { %s3547_s3 = smov 128   ;;  %s3548_s14 = smov 8  }
  0x44   :  { %61 = dma.hbm_to_vmem [thread:$0]  %s3947_s4, 24576, %s3614_s22, [#allocation9], %s3547_s3, %s3547_s3, %s3548_s14  }
  0x45   :  { %3533 = dma.done.wait [#allocation3], 6144  }
  0x46   :  { %3534 = vsyncadd [#allocation3], 4294961152 }
  0x47   :  { %3535 = dma.done.wait [#allocation6], 5568  }
  0x48   :  { %3536 = vsyncadd [#allocation6], 4294961728 }
  0x49   :  { %3537 = dma.done.wait [#allocation9], 24576  }
  0x4a   :  { %3538 = vsyncadd [#allocation9], 4294942720  ;;  %v3549_v0 = vmov 0   ;;  %v3015_v1 = vld [vmem:[#allocation2 + $0x4] ss:$48 sps:$4 sm:$0xff]   ;;  %vm428_vm0 = vcmask 523264  }
  0x4b   :  { %464 = vmatprep.mubr.bf16.mxu0 %v3549_v0  ;;  %505 = vmatprep.mubr.bf16.mxu1 %v3549_v0  ;;  %v3017_v2 = vld [vmem:[#allocation2 + $0xc] ss:$48 sps:$4 sm:$0xff]   ;;  %v3019_v3 = vld [vmem:[#allocation2] ss:$48 sps:$4 sm:$0xff]   ;;  %v3020_v4 = vld [vmem:[#allocation2 + $0x8] ss:$48 sps:$4 sm:$0xff]  }
  0x4c   :  { %432 = vmatprep.subr.bf16.mxu0 %v3015_v1  ;;  %473 = vmatprep.subr.bf16.mxu1 %v3017_v2  ;;  %v3021_v5 = vld [vmem:[#allocation2 + $0x64] ss:$48 sps:$4 sm:$0xff]   ;;  %v3023_v6 = vld [vmem:[#allocation2 + $0x6c] ss:$48 sps:$4 sm:$0xff]   ;;  %v3025_v7 = vld [vmem:[#allocation2 + $0x60] ss:$48 sps:$4 sm:$0xff]  }
  0x4d   :  { %433 = vmatpush1.bf16.msra.mxu0 %v3019_v3  ;;  %474 = vmatpush1.bf16.msra.mxu1 %v3020_v4  ;;  %v3026_v8 = vld [vmem:[#allocation2 + $0x68] ss:$48 sps:$4 sm:$0xff]   ;;  %v3027_v9 = vld [vmem:[#allocation2 + $0xc4] ss:$48 sps:$4 sm:$0xff]   ;;  %v3029_v10 = vld [vmem:[#allocation2 + $0xcc] ss:$48 sps:$4 sm:$0xff]  }
  0x4e   :  { %434 = vmatprep.subr.bf16.mxu0 %v3021_v5  ;;  %475 = vmatprep.subr.bf16.mxu1 %v3023_v6  ;;  %v3031_v11 = vld [vmem:[#allocation2 + $0xc0] ss:$48 sps:$4 sm:$0xff]   ;;  %v3032_v12 = vld [vmem:[#allocation2 + $0xc8] ss:$48 sps:$4 sm:$0xff]   ;;  %v3033_v13 = vld [vmem:[#allocation2 + $0x124] ss:$48 sps:$4 sm:$0xff]  }
  0x4f   :  { %v3035_v14 = vld [vmem:[#allocation2 + $0x12c] ss:$48 sps:$4 sm:$0xff]   ;;  %v3037_v15 = vld [vmem:[#allocation2 + $0x120] ss:$48 sps:$4 sm:$0xff]   ;;  %v3038_v16 = vld [vmem:[#allocation2 + $0x128] ss:$48 sps:$4 sm:$0xff]  }
  0x50   :  { %v3041_v17 = vld [vmem:[#allocation2 + $0x1c] ss:$48 sps:$4 sm:$0xff]   ;;  %v3650_v18 = vld [vmem:[%s3945_s2] sm:$0x1]  ;;  %v3039_v19 = vld [vmem:[#allocation2 + $0x18] ss:$48 sps:$4 sm:$0xff]  }
  0x51   :  { %435 = vmatpush1.bf16.msra.mxu0 %v3025_v7  ;;  %476 = vmatpush1.bf16.msra.mxu1 %v3026_v8  ;;  %v3044_v20 = vld [vmem:[#allocation2 + $0x7c] ss:$48 sps:$4 sm:$0xff]   ;;  %v3053_v21 = vld [vmem:[#allocation2 + $0x14] ss:$48 sps:$4 sm:$0xff]   ;;  %v3051_v22 = vld [vmem:[#allocation2 + $0x10] ss:$48 sps:$4 sm:$0xff]  }
  0x52   :  { %436 = vmatprep.subr.bf16.mxu0 %v3027_v9  ;;  %477 = vmatprep.subr.bf16.mxu1 %v3029_v10  ;;  %v3056_v23 = vld [vmem:[#allocation2 + $0x74] ss:$48 sps:$4 sm:$0xff]   ;;  %v3042_v24 = vld [vmem:[#allocation2 + $0x78] ss:$48 sps:$4 sm:$0xff]   ;;  %v3047_v25 = vld [vmem:[#allocation2 + $0xdc] ss:$48 sps:$4 sm:$0xff]  }
  0x53   :  { %v3054_v26 = vld [vmem:[#allocation2 + $0x70] ss:$48 sps:$4 sm:$0xff]   ;;  %v3059_v27 = vld [vmem:[#allocation2 + $0xd4] ss:$48 sps:$4 sm:$0xff]   ;;  %v3045_v28 = vld [vmem:[#allocation2 + $0xd8] ss:$48 sps:$4 sm:$0xff]  }
  0x54   :  { %v3050_v29 = vld [vmem:[#allocation2 + $0x13c] ss:$48 sps:$4 sm:$0xff]   ;;  %v3057_v30 = vld [vmem:[#allocation2 + $0xd0] ss:$48 sps:$4 sm:$0xff]   ;;  %v3062_v31 = vld [vmem:[#allocation2 + $0x134] ss:$48 sps:$4 sm:$0xff]  }
  0x55   :  { %437 = vmatpush1.bf16.msra.mxu0 %v3031_v11  ;;  %478 = vmatpush1.bf16.msra.mxu1 %v3032_v12  ;;  %v3048_v32 = vld [vmem:[#allocation2 + $0x138] ss:$48 sps:$4 sm:$0xff]   ;;  %v3077_v33 = vld [vmem:[#allocation2 + $0x2c] ss:$48 sps:$4 sm:$0xff]   ;;  %v3060_v34 = vld [vmem:[#allocation2 + $0x130] ss:$48 sps:$4 sm:$0xff]  }
  0x56   :  { %438 = vmatprep.subr.bf16.mxu0 %v3033_v13  ;;  %479 = vmatprep.subr.bf16.mxu1 %v3035_v14  ;;  %v3065_v35 = vld [vmem:[#allocation2 + $0x24] ss:$48 sps:$4 sm:$0xff]   ;;  %v3075_v36 = vld [vmem:[#allocation2 + $0x28] ss:$48 sps:$4 sm:$0xff]   ;;  %v3080_v37 = vld [vmem:[#allocation2 + $0x8c] ss:$48 sps:$4 sm:$0xff]  }
  0x57   :  { %v3063_v38 = vld [vmem:[#allocation2 + $0x20] ss:$48 sps:$4 sm:$0xff]   ;;  %v3068_v39 = vld [vmem:[#allocation2 + $0x84] ss:$48 sps:$4 sm:$0xff]   ;;  %v3078_v40 = vld [vmem:[#allocation2 + $0x88] ss:$48 sps:$4 sm:$0xff]  }
  0x58   :  { %v3083_v41 = vld [vmem:[#allocation2 + $0xec] ss:$48 sps:$4 sm:$0xff]   ;;  %v3066_v42 = vld [vmem:[#allocation2 + $0x80] ss:$48 sps:$4 sm:$0xff]   ;;  %v3071_v43 = vld [vmem:[#allocation2 + $0xe4] ss:$48 sps:$4 sm:$0xff]  }
  0x59   :  { %439 = vmatpush1.bf16.msra.mxu0 %v3037_v15  ;;  %480 = vmatpush1.bf16.msra.mxu1 %v3038_v16  ;;  %v3081_v44 = vld [vmem:[#allocation2 + $0xe8] ss:$48 sps:$4 sm:$0xff]   ;;  %v3086_v45 = vld [vmem:[#allocation2 + $0x14c] ss:$48 sps:$4 sm:$0xff]   ;;  %v3069_v46 = vld [vmem:[#allocation2 + $0xe0] ss:$48 sps:$4 sm:$0xff]  }
  0x5a   :  { %555 = vmatprep.subr.bf16.mxu1 %v3041_v17  ;;  %514 = vmatprep.subr.bf16.mxu0 %v3053_v21  ;;  %v3074_v47 = vld [vmem:[#allocation2 + $0x144] ss:$48 sps:$4 sm:$0xff]   ;;  %v3084_v48 = vld [vmem:[#allocation2 + $0x148] ss:$48 sps:$4 sm:$0xff]   ;;  %v3072_v49 = vld [vmem:[#allocation2 + $0x140] ss:$48 sps:$4 sm:$0xff]  }
  0x5b   :  { %v3089_v50 = vld [vmem:[#allocation8 + $0x4] ss:$8 sps:$4 sm:$0xff]   ;;  %v3087_v52 = vld [vmem:[#allocation8] ss:$8 sps:$4 sm:$0xff]   ;;  %v3092_v53 = vld [vmem:[#allocation8 + $0x14] ss:$8 sps:$4 sm:$0xff]  }
  0x5c   :  { %2715 = vmatmul.mubr.msk.bf16.vlgmr.msra.gmra.mrb[0].mxu0 %vm428_vm0, %v3650_v18  ;;  %2716 = vmatmul.mubr.msk.bf16.vlgmr.msra.gmra.mrb[0].mxu1 %vm428_vm0, %v3650_v18  ;;  %v3104_v51 = vld [vmem:[#allocation8 + $0x304] ss:$8 sps:$4 sm:$0xff]   ;;  %v3102_v54 = vld [vmem:[#allocation8 + $0x300] ss:$8 sps:$4 sm:$0xff]   ;;  %v3110_v55 = vld [vmem:[#allocation8 + $0x314] ss:$8 sps:$4 sm:$0xff]  }
  0x5d   :  { %556 = vmatpush1.bf16.msra.mxu1 %v3039_v19  ;;  %587 = vmatprep.mubr.bf16.mxu1 %v3549_v0  ;;  %v3090_v56 = vld [vmem:[#allocation8 + $0x10] ss:$8 sps:$4 sm:$0xff]   ;;  %v3095_v57 = vld [vmem:[#allocation8 + $0x24] ss:$8 sps:$4 sm:$0xff]   ;;  %v3093_v60 = vld [vmem:[#allocation8 + $0x20] ss:$8 sps:$4 sm:$0xff]  }
  0x5e   :  { %557 = vmatprep.subr.bf16.mxu1 %v3044_v20  ;;  %515 = vmatpush1.bf16.msra.mxu0 %v3051_v22  ;;  %v3108_v58 = vld [vmem:[#allocation8 + $0x310] ss:$8 sps:$4 sm:$0xff]   ;;  %v3116_v59 = vld [vmem:[#allocation8 + $0x324] ss:$8 sps:$4 sm:$0xff]   ;;  %v3098_v61 = vld [vmem:[#allocation8 + $0x34] ss:$8 sps:$4 sm:$0xff]  }
  0x5f   :  { %546 = vmatprep.mubr.bf16.mxu0 %v3549_v0  ;;  %516 = vmatprep.subr.bf16.mxu0 %v3056_v23  ;;  %v3114_v62 = vld [vmem:[#allocation8 + $0x320] ss:$8 sps:$4 sm:$0xff]   ;;  %v3096_v63 = vld [vmem:[#allocation8 + $0x30] ss:$8 sps:$4 sm:$0xff]   ;;  %v3107_v2 = vld [vmem:[#allocation8 + $0x54] ss:$8 sps:$4 sm:$0xff]  }
  0x60   :  { %v3099_v1 = vld [vmem:[#allocation8 + $0x40] ss:$8 sps:$4 sm:$0xff]   ;;  %v3105_v3 = vld [vmem:[#allocation8 + $0x50] ss:$8 sps:$4 sm:$0xff]   ;;  %v3113_v4 = vld [vmem:[#allocation8 + $0x64] ss:$8 sps:$4 sm:$0xff]  }
  0x61   :  { %558 = vmatpush1.bf16.msra.mxu1 %v3042_v24  ;;  %v3111_v5 = vld [vmem:[#allocation8 + $0x60] ss:$8 sps:$4 sm:$0xff]   ;;  %v3119_v6 = vld [vmem:[#allocation8 + $0x74] ss:$8 sps:$4 sm:$0xff]   ;;  %v3117_v8 = vld [vmem:[#allocation8 + $0x70] ss:$8 sps:$4 sm:$0xff]  }
  0x62   :  { %559 = vmatprep.subr.bf16.mxu1 %v3047_v25  ;;  %517 = vmatpush1.bf16.msra.mxu0 %v3054_v26  ;;  %v3122_v7 = vld [vmem:[#allocation8 + $0x334] ss:$8 sps:$4 sm:$0xff]   ;;  %v3120_v9 = vld [vmem:[#allocation8 + $0x330] ss:$8 sps:$4 sm:$0xff]   ;;  %v3125_v10 = vld [vmem:[#allocation8 + $0x84] ss:$8 sps:$4 sm:$0xff]  }
  0x63   :  { %518 = vmatprep.subr.bf16.mxu0 %v3059_v27  ;;  %v3128_v11 = vld [vmem:[#allocation8 + $0x344] ss:$8 sps:$4 sm:$0xff]   ;;  %v3123_v12 = vld [vmem:[#allocation8 + $0x80] ss:$8 sps:$4 sm:$0xff]   ;;  %v3131_v14 = vld [vmem:[#allocation8 + $0x94] ss:$8 sps:$4 sm:$0xff]  }
  0x64   :  { %v3126_v13 = vld [vmem:[#allocation8 + $0x340] ss:$8 sps:$4 sm:$0xff]   ;;  %v3134_v15 = vld [vmem:[#allocation8 + $0x354] ss:$8 sps:$4 sm:$0xff]   ;;  %v3129_v16 = vld [vmem:[#allocation8 + $0x90] ss:$8 sps:$4 sm:$0xff]  }
  0x65   :  { %560 = vmatpush1.bf16.msra.mxu1 %v3045_v28  ;;  %v3132_v17 = vld [vmem:[#allocation8 + $0x350] ss:$8 sps:$4 sm:$0xff]   ;;  %v3140_v19 = vld [vmem:[#allocation8 + $0x364] ss:$8 sps:$4 sm:$0xff]   ;;  %v3135_v20 = vld [vmem:[#allocation8 + $0xa0] ss:$8 sps:$4 sm:$0xff]  }
  0x66   :  { %561 = vmatprep.subr.bf16.mxu1 %v3050_v29  ;;  %519 = vmatpush1.bf16.msra.mxu0 %v3057_v30  ;;  %v3138_v21 = vld [vmem:[#allocation8 + $0x360] ss:$8 sps:$4 sm:$0xff]   ;;  %v3143_v22 = vld [vmem:[#allocation8 + $0xb4] ss:$8 sps:$4 sm:$0xff]   ;;  %v3141_v24 = vld [vmem:[#allocation8 + $0xb0] ss:$8 sps:$4 sm:$0xff]  }
  0x67   :  { %520 = vmatprep.subr.bf16.mxu0 %v3062_v31  ;;  %v3146_v23 = vld [vmem:[#allocation8 + $0x374] ss:$8 sps:$4 sm:$0xff]   ;;  %v3144_v25 = vld [vmem:[#allocation8 + $0x370] ss:$8 sps:$4 sm:$0xff]   ;;  %v3149_v26 = vld [vmem:[#allocation8 + $0xc4] ss:$8 sps:$4 sm:$0xff]  }
  0x68   :  { %v3152_v27 = vld [vmem:[#allocation8 + $0x384] ss:$8 sps:$4 sm:$0xff]   ;;  %v3147_v28 = vld [vmem:[#allocation8 + $0xc0] ss:$8 sps:$4 sm:$0xff]   ;;  %v3155_v30 = vld [vmem:[#allocation8 + $0xd4] ss:$8 sps:$4 sm:$0xff]  }
  0x69   :  { %562 = vmatpush1.bf16.msra.mxu1 %v3048_v32  ;;  %v3150_v29 = vld [vmem:[#allocation8 + $0x380] ss:$8 sps:$4 sm:$0xff]   ;;  %v3158_v31 = vld [vmem:[#allocation8 + $0x394] ss:$8 sps:$4 sm:$0xff]   ;;  %v3153_v32 = vld [vmem:[#allocation8 + $0xd0] ss:$8 sps:$4 sm:$0xff]  }
  0x6a   :  { %637 = vmatprep.subr.bf16.mxu1 %v3077_v33  ;;  %521 = vmatpush1.bf16.msra.mxu0 %v3060_v34  ;;  %v3156_v33 = vld [vmem:[#allocation8 + $0x390] ss:$8 sps:$4 sm:$0xff]   ;;  %v3161_v34 = vld [vmem:[#allocation8 + $0xe4] ss:$8 sps:$4 sm:$0xff]   ;;  %s3550_s2 = smov [#allocation10]  }
  0x6b   :  { %596 = vmatprep.subr.bf16.mxu0 %v3065_v35  ;;  %v3164_v35 = vld [vmem:[#allocation8 + $0x3a4] ss:$8 sps:$4 sm:$0xff]   ;;  %s2653_s17 = sshll.u32 %s3550_s2, 4  ;;  %s2654_s17 = int_to_ptr.vmem [resolvable:$true] %s2653_s17 }
  0x6c   :  { %2718 = vmatmul.mubr.msk.bf16.vlgmr.msra.gmra.mrb[4].mxu1 %vm428_vm0, %v3650_v18  ;;  %s3511_s18 = scalar_lea.vmem %s2654_s17, 1792  ;;  %p3516_p5 = scmp.lt.s32.totalorder %s2654_s17, %s2654_s17 }
  0x6d   :  { %638 = vmatpush1.bf16.msra.mxu1 %v3075_v36  ;;  %669 = vmatprep.mubr.bf16.mxu1 %v3549_v0  ;;  %v3159_v36 = vld [vmem:[#allocation8 + $0xe0] ss:$8 sps:$4 sm:$0xff]   ;;  %p3512_p4 = scmp.ne.s32.totalorder %s2654_s17, %s3511_s18  ;;  %p3517_p6 = scmp.lt.s32.totalorder %s3511_s18, %s3511_s18 }
  0x6e   :  { %2717 = vmatmul.mubr.msk.bf16.vlgmr.msra.gmra.mrb[4].mxu0 %vm428_vm0, %v3650_v18  ;;  %639 = vmatprep.subr.bf16.mxu1 %v3080_v37  ;;  %v3162_v37 = vld [vmem:[#allocation8 + $0x3a0] ss:$8 sps:$4 sm:$0xff]  }
  0x6f   :  { %597 = vmatpush1.bf16.msra.mxu0 %v3063_v38  ;;  %628 = vmatprep.mubr.bf16.mxu0 %v3549_v0  ;;  %v3101_v0 = vld [vmem:[#allocation8 + $0x44] ss:$8 sps:$4 sm:$0xff]   ;;  %v3167_v38 = vld [vmem:[#allocation8 + $0xf4] ss:$8 sps:$4 sm:$0xff]   ;;  %p3518_p7 = por %p3517_p6, %p3516_p5 }
  0x70   :  { %598 = vmatprep.subr.bf16.mxu0 %v3068_v39  ;;  %v3170_v39 = vld [vmem:[#allocation8 + $0x3b4] ss:$8 sps:$4 sm:$0xff]  }
  0x71   :  { %640 = vmatpush1.bf16.msra.mxu1 %v3078_v40  ;;  %v3165_v40 = vld [vmem:[#allocation8 + $0xf0] ss:$8 sps:$4 sm:$0xff]   ;;  %p3519_p8 = pnand %p3518_p7, %p3512_p4 }
  0x72   :  { %641 = vmatprep.subr.bf16.mxu1 %v3083_v41  ;;  %v3168_v41 = vld [vmem:[#allocation8 + $0x3b0] ss:$8 sps:$4 sm:$0xff]  }
  0x73   :  { %599 = vmatpush1.bf16.msra.mxu0 %v3066_v42  ;;  %v3173_v42 = vld [vmem:[#allocation8 + $0x104] ss:$8 sps:$4 sm:$0xff]  }
  0x74   :  { %600 = vmatprep.subr.bf16.mxu0 %v3071_v43  ;;  %v3176_v43 = vld [vmem:[#allocation8 + $0x3c4] ss:$8 sps:$4 sm:$0xff]  }
  0x75   :  { %642 = vmatpush1.bf16.msra.mxu1 %v3081_v44  ;;  %v3174_v44 = vld [vmem:[#allocation8 + $0x3c0] ss:$8 sps:$4 sm:$0xff]  }
  0x76   :  { %643 = vmatprep.subr.bf16.mxu1 %v3086_v45  ;;  %v3182_v45 = vld [vmem:[#allocation8 + $0x3d4] ss:$8 sps:$4 sm:$0xff]  }
  0x77   :  { %601 = vmatpush1.bf16.msra.mxu0 %v3069_v46  ;;  %v3180_v46 = vld [vmem:[#allocation8 + $0x3d0] ss:$8 sps:$4 sm:$0xff]  }
  0x78   :  { %602 = vmatprep.subr.bf16.mxu0 %v3074_v47  ;;  %v3188_v47 = vld [vmem:[#allocation8 + $0x3e4] ss:$8 sps:$4 sm:$0xff]  }
  0x79   :  { %644 = vmatpush1.bf16.msra.mxu1 %v3084_v48  ;;  %v3186_v48 = vld [vmem:[#allocation8 + $0x3e0] ss:$8 sps:$4 sm:$0xff]  }
  0x7a   :  { %2208 = vmatprep.subr.bf16.mxu1 %v3089_v50  ;;  %v3194_v50 = vld [vmem:[#allocation8 + $0x3f4] ss:$8 sps:$4 sm:$0xff]  }
  0x7b   :  { %603 = vmatpush1.bf16.msra.mxu0 %v3072_v49  ;;  %v3192_v49 = vld [vmem:[#allocation8 + $0x3f0] ss:$8 sps:$4 sm:$0xff]  }
  0x7c   :  { %2720 = vmatmul.mubr.msk.bf16.vlgmr.msra.gmra.mrb[8].mxu1 %vm428_vm0, %v3650_v18  ;;  %2421 = vmatprep.subr.bf16.mxu0 %v3104_v51  ;;  %v3200_v51 = vld [vmem:[#allocation8 + $0x404] ss:$8 sps:$4 sm:$0xff]  }
  0x7d   :  { %2209 = vmatpush1.bf16.msra.mxu1 %v3087_v52  ;;  %v368_v52 = vlaneseq }
  0x7e   :  { %2719 = vmatmul.mubr.msk.bf16.vlgmr.msra.gmra.mrb[8].mxu0 %vm428_vm0, %v3650_v18  ;;  %2210 = vmatprep.subr.bf16.mxu1 %v3092_v53  ;;  %v3137_v18 = vld [vmem:[#allocation8 + $0xa4] ss:$8 sps:$4 sm:$0xff]  }
  0x7f   :  { %2422 = vmatpush1.bf16.msra.mxu0 %v3102_v54  ;;  %v3668_v53 = vshrl.u32 %v368_v52, 7 }
  0x80   :  { %2423 = vmatprep.subr.bf16.mxu0 %v3110_v55  ;;  %v3673_v55 = vld [vmem:[#allocation5] sm:$0xff] }
  0x81   :  { %2211 = vmatpush1.bf16.msra.mxu1 %v3090_v56  ;;  %v3671_v54 = vsub.s32 0, %v3668_v53  ;;  %v374_v56 = vsub.s32 1, %v3668_v53 }
  0x82   :  { %2212 = vmatprep.subr.bf16.mxu1 %v3095_v57 }
  0x83   :  { %2424 = vmatpush1.bf16.msra.mxu0 %v3108_v58  ;;  %v371_v57 = vrot.slane %v3673_v55, %v3671_v54  ;;  %v375_v58 = vrot.slane %v3673_v55, %v374_v56 }
  0x84   :  { %2425 = vmatprep.subr.bf16.mxu0 %v3116_v59 }
  0x85   :  { %2213 = vmatpush1.bf16.msra.mxu1 %v3093_v60 }
  0x86   :  { %2214 = vmatprep.subr.bf16.mxu1 %v3098_v61 }
  0x87   :  { %2426 = vmatpush1.bf16.msra.mxu0 %v3114_v62 }
  0x88   :  { %2427 = vmatprep.subr.bf16.mxu0 %v3122_v7  ;;  %v382_v7 = vsub.s32 3, %v3668_v53 }
  0x89   :  { %2215 = vmatpush1.bf16.msra.mxu1 %v3096_v63 }
  0x8a   :  { %2216 = vmatprep.subr.bf16.mxu1 %v3101_v0 }
  0x8b   :  { %2428 = vmatpush1.bf16.msra.mxu0 %v3120_v9  ;;  %v398_v9 = vsub.s32 7, %v3668_v53 }
  0x8c   :  { %2429 = vmatprep.subr.bf16.mxu0 %v3128_v11 }
  0x8d   :  { %2217 = vmatpush1.bf16.msra.mxu1 %v3099_v1 }
  0x8e   :  { %2218 = vmatprep.subr.bf16.mxu1 %v3107_v2 }
  0x8f   :  { %2430 = vmatpush1.bf16.msra.mxu0 %v3126_v13 }
  0x90   :  { %2431 = vmatprep.subr.bf16.mxu0 %v3134_v15 }
  0x91   :  { %2219 = vmatpush1.bf16.msra.mxu1 %v3105_v3 }
  0x92   :  { %2220 = vmatprep.subr.bf16.mxu1 %v3113_v4 }
  0x93   :  { %2432 = vmatpush1.bf16.msra.mxu0 %v3132_v17 }
  0x94   :  { %2433 = vmatprep.subr.bf16.mxu0 %v3140_v19 }
  0x95   :  { %2221 = vmatpush1.bf16.msra.mxu1 %v3111_v5 }
  0x96   :  { %2222 = vmatprep.subr.bf16.mxu1 %v3119_v6 }
  0x97   :  { %2434 = vmatpush1.bf16.msra.mxu0 %v3138_v21 }
  0x98   :  { %2435 = vmatprep.subr.bf16.mxu0 %v3146_v23 }
  0x99   :  { %2223 = vmatpush1.bf16.msra.mxu1 %v3117_v8  ;;  %v394_v8 = vsub.s32 6, %v3668_v53 }
  0x9a   :  { %2224 = vmatprep.subr.bf16.mxu1 %v3125_v10  ;;  %v383_v10 = vrot.slane %v3673_v55, %v382_v7 }
  0x9b   :  { %2436 = vmatpush1.bf16.msra.mxu0 %v3144_v25  ;;  %v395_v11 = vrot.slane %v3673_v55, %v394_v8 }
  0x9c   :  { %2437 = vmatprep.subr.bf16.mxu0 %v3152_v27 }
  0x9d   :  { %2225 = vmatpush1.bf16.msra.mxu1 %v3123_v12  ;;  %v399_v12 = vrot.slane %v3673_v55, %v398_v9  ;;  %v3171_v9 = vld [vmem:[#allocation8 + $0x100] ss:$8 sps:$4 sm:$0xff]  }
  0x9e   :  { %2226 = vmatprep.subr.bf16.mxu1 %v3131_v14 }
  0x9f   :  { %2438 = vmatpush1.bf16.msra.mxu0 %v3150_v29 }
  0xa0   :  { %2439 = vmatprep.subr.bf16.mxu0 %v3158_v31  ;;  %v750_v31 = vld [vmem:[#allocation7] sm:$0xff] }
  0xa1   :  { %2227 = vmatpush1.bf16.msra.mxu1 %v3129_v16 }
  0xa2   :  { %2228 = vmatprep.subr.bf16.mxu1 %v3137_v18 }
  0xa3   :  { %2440 = vmatpush1.bf16.msra.mxu0 %v3156_v33  ;;  %v792_v33 = vunpack.c.l.bf16 %v750_v31 }
  0xa4   :  { %2441 = vmatprep.subr.bf16.mxu0 %v3164_v35  ;;  %v762_v35 = vld [vmem:[#allocation7 + $0x60] sm:$0xff] }
  0xa5   :  { %2229 = vmatpush1.bf16.msra.mxu1 %v3135_v20 }
  0xa6   :  { %2230 = vmatprep.subr.bf16.mxu1 %v3143_v22 }
  0xa7   :  { %2442 = vmatpush1.bf16.msra.mxu0 %v3162_v37 }
  0xa8   :  { %2443 = vmatprep.subr.bf16.mxu0 %v3170_v39  ;;  %v793_v39 = vunpack.c.h.bf16 %v750_v31 }
  0xa9   :  { %2231 = vmatpush1.bf16.msra.mxu1 %v3141_v24 }
  0xaa   :  { %2232 = vmatprep.subr.bf16.mxu1 %v3149_v26 }
  0xab   :  { %2444 = vmatpush1.bf16.msra.mxu0 %v3168_v41 }
  0xac   :  { %2445 = vmatprep.subr.bf16.mxu0 %v3176_v43 }
  0xad   :  { %2233 = vmatpush1.bf16.msra.mxu1 %v3147_v28 }
  0xae   :  { %2234 = vmatprep.subr.bf16.mxu1 %v3155_v30 }
  0xaf   :  { %2446 = vmatpush1.bf16.msra.mxu0 %v3174_v44 }
  0xb0   :  { %2447 = vmatprep.subr.bf16.mxu0 %v3182_v45 }
  0xb1   :  { %2235 = vmatpush1.bf16.msra.mxu1 %v3153_v32  ;;  %v756_v32 = vld [vmem:[#allocation7 + $0x30] sm:$0xff] }
  0xb2   :  { %2236 = vmatprep.subr.bf16.mxu1 %v3161_v34  ;;  %v804_v34 = vunpack.c.l.bf16 %v756_v32 }
  0xb3   :  { %2448 = vmatpush1.bf16.msra.mxu0 %v3180_v46 }
  0xb4   :  { %2449 = vmatprep.subr.bf16.mxu0 %v3188_v47 }
  0xb5   :  { %2237 = vmatpush1.bf16.msra.mxu1 %v3159_v36  ;;  %v768_v36 = vld [vmem:[#allocation7 + $0x90] sm:$0xff] }
  0xb6   :  { %2238 = vmatprep.subr.bf16.mxu1 %v3167_v38  ;;  %v829_v43 = vunpack.c.h.bf16 %v768_v36 }
  0xb7   :  { %2450 = vmatpush1.bf16.msra.mxu0 %v3186_v48  ;;  %v816_v48 = vunpack.c.l.bf16 %v762_v35 }
  0xb8   :  { %2451 = vmatprep.subr.bf16.mxu0 %v3194_v50  ;;  %v3705_v50 = vld [vmem:[#allocation7 + $0xf0] sm:$0xff] }
  0xb9   :  { %2239 = vmatpush1.bf16.msra.mxu1 %v3165_v40  ;;  %v805_v40 = vunpack.c.h.bf16 %v756_v32 }
  0xba   :  { %2279 = vmatprep.subr.bf16.mxu1 %v3173_v42  ;;  %v817_v42 = vunpack.c.h.bf16 %v762_v35  ;;  %v3728_v35 = vld [vmem:[#allocation7 + $0x120] sm:$0x11] }
  0xbb   :  { %2452 = vmatpush1.bf16.msra.mxu0 %v3192_v49  ;;  %v3703_v49 = vld [vmem:[#allocation7 + $0xc0] sm:$0xff] }
  0xbc   :  { %2492 = vmatprep.subr.bf16.mxu0 %v3200_v51 }
 0x12f   :  { %v466_v59 = vpop.f32.mrb[0].mxu0  ;;  %v3681_v60 = vpop.f32.mrb[0].mxu1 }
 0x130   :  { %v467_v61 = vadd.f32 %v466_v59, %v371_v57  ;;  %v468_v62 = vpop.f32.mrb[1].mxu0  ;;  %v509_v63 = vpop.f32.mrb[1].mxu1 }
 0x131   :  { %v469_v0 = vadd.f32 %v468_v62, %v375_v58  ;;  %v511_v1 = vpop.f32.mrb[2].mxu1  ;;  %v470_v2 = vpop.f32.mrb[2].mxu0  ;;  %v510_v15 = vadd.f32 %v509_v63, %v383_v10  ;;  %v3711_v62 = vld [vmem:[#allocation5 + $0x8] sm:$0xf]  ;;  %v841_v10 = vunpack.c.h.bf16 %v3703_v49 }
 0x132   :  { %v2721_v3 = vmul.f32 -1.442695, %v467_v61  ;;  %v512_v4 = vpop.f32.mrb[3].mxu1  ;;  %v471_v5 = vpop.f32.mrb[3].mxu0  ;;  %v828_v61 = vunpack.c.l.bf16 %v768_v36  ;;  %v3730_v36 = vld [vmem:[#allocation7 + $0x78] sm:$0xff] }
 0x133   :  { %v2722_v6 = vmul.f32 -1.442695, %v469_v0  ;;  %v2724_v27 = vmul.f32 -1.442695, %v510_v15 }
 0x134   :  { %3375 = vpow2.f32 %v2721_v3 }
 0x135   :  { %3377 = vpow2.f32 %v2722_v6 }
 0x13e   :  { %v3376_v13 = vpop.eup %3375 }
 0x13f   :  { %v714_v14 = vadd.f32 1.0, %v3376_v13  ;;  %v589_v16 = vpop.f32.mrb[4].mxu1  ;;  %v3378_v17 = vpop.eup %3377 }
 0x140   :  { %v590_v18 = vadd.f32 %v589_v16, %v395_v11  ;;  %v591_v19 = vpop.f32.mrb[5].mxu1  ;;  %v715_v20 = vadd.f32 1.0, %v3378_v17  ;;  %v853_v11 = vunpack.c.h.bf16 %v3705_v50  ;;  %v407_v16 = vrot.slane %v3711_v62, %v374_v56 }
 0x141   :  { %3379 = vrcp.f32 %v714_v14  ;;  %v592_v21 = vadd.f32 %v591_v19, %v399_v12  ;;  %v593_v22 = vpop.f32.mrb[6].mxu1  ;;  %v3691_v23 = vpop.f32.mrb[4].mxu0  ;;  %v3179_v14 = vld [vmem:[#allocation8 + $0x114] ss:$8 sps:$4 sm:$0xff]  }
 0x142   :  { %v2727_v24 = vmul.f32 -1.442695, %v590_v18  ;;  %v594_v25 = vpop.f32.mrb[7].mxu1  ;;  %v3693_v26 = vpop.f32.mrb[5].mxu0  ;;  %3381 = vrcp.f32 %v715_v20  ;;  %v3177_v22 = vld [vmem:[#allocation8 + $0x110] ss:$8 sps:$4 sm:$0xff]  }
 0x143   :  { %v2728_v28 = vmul.f32 -1.442695, %v592_v21  ;;  %v552_v29 = vpop.f32.mrb[6].mxu0 }
 0x144   :  { %v553_v30 = vpop.f32.mrb[7].mxu0  ;;  %3383 = vpow2.f32 %v2727_v24  ;;  %v759_v29 = vld [vmem:[#allocation7 + $0x48] sm:$0xff] }
 0x145   :  { %3385 = vpow2.f32 %v2728_v28  ;;  %v753_v28 = vld [vmem:[#allocation7 + $0x18] sm:$0xff] }
 0x146   :  { %3387 = vpow2.f32 %v2724_v27  ;;  %v3185_v27 = vld [vmem:[#allocation8 + $0x124] ss:$8 sps:$4 sm:$0xff]   ;;  %v3183_v30 = vld [vmem:[#allocation8 + $0x120] ss:$8 sps:$4 sm:$0xff]  }
 0x14b   :  { %v3380_v37 = vpop.eup %3379 }
 0x14c   :  { %v3696_v38 = vrot.slane %v3380_v37, %v3671_v54  ;;  %v3382_v41 = vpop.eup %3381  ;;  %v3732_v37 = vld [vmem:[#allocation7 + $0xa8] sm:$0xff] }
 0x14d   :  { %v3699_v44 = vrot.slane %v3382_v41, %v3671_v54  ;;  %v840_v41 = vunpack.c.l.bf16 %v3703_v49 }
 0x14e   :  { %v924_v45 = vmul.f32 %v3696_v38, %v792_v33  ;;  %v936_v46 = vmul.f32 %v3696_v38, %v804_v34  ;;  %v3384_v47 = vpop.eup %3383  ;;  %v948_v20 = vmul.f32 %v3696_v38, %v816_v48  ;;  %v960_v21 = vmul.f32 %v3696_v38, %v828_v61  ;;  %v3197_v61 = vld [vmem:[#allocation8 + $0x144] ss:$8 sps:$4 sm:$0xff]  }
 0x14f   :  { %v3707_v51 = vpop.f32.mrb[8].mxu1  ;;  %v3386_v52 = vpop.eup %3385  ;;  %v720_v57 = vadd.f32 1.0, %v3384_v47  ;;  %v925_v58 = vmul.f32 %v3699_v44, %v793_v39  ;;  %v937_v59 = vmul.f32 %v3699_v44, %v805_v40  ;;  %v949_v3 = vmul.f32 %v3699_v44, %v817_v42  ;;  %v3191_v39 = vld [vmem:[#allocation8 + $0x134] ss:$8 sps:$4 sm:$0xff]  }
 0x150   :  { %v3713_v63 = vpop.f32.mrb[9].mxu1  ;;  %v3388_v0 = vpop.eup %3387  ;;  %v721_v1 = vadd.f32 1.0, %v3386_v52  ;;  %v1008_v2 = vpack.c.bf16 %v936_v46, %v924_v45  ;;  %v961_v4 = vmul.f32 %v3699_v44, %v829_v43  ;;  %v973_v24 = vmul.f32 %v3699_v44, %v841_v10 }
 0x151   :  { %v3717_v5 = vpop.f32.mrb[8].mxu0  ;;  %v675_v6 = vpop.f32.mrb[10].mxu1  ;;  %3389 = vrcp.f32 %v720_v57  ;;  %v1009_v8 = vpack.c.bf16 %v937_v59, %v925_v58  ;;  %v717_v18 = vadd.f32 1.0, %v3388_v0  ;;  %v985_v25 = vmul.f32 %v3699_v44, %v853_v11 }
 0x152   :  { %v632_v12 = vpop.f32.mrb[9].mxu0  ;;  %v676_v13 = vpop.f32.mrb[11].mxu1  ;;  %3391 = vrcp.f32 %v721_v1  ;;  %v1021_v15 = vpack.c.bf16 %v961_v4, %v949_v3  ;;  %v1020_v31 = vpack.c.bf16 %v960_v21, %v948_v20  ;;  %v798_v34 = vunpack.c.l.bf16 %v753_v28  ;;  %v3765_v20 = vld [vmem:[#allocation7 + $0x108] sm:$0xff] }
 0x153   :  { %v634_v17 = vpop.f32.mrb[10].mxu0  ;;  %2240 = vmatprep.mubr.bf16.mxu1 %v1009_v8  ;;  %v633_v56 = vadd.f32 %v632_v12, %v407_v16  ;;  %3393 = vrcp.f32 %v717_v18  ;;  %v1033_v33 = vpack.c.bf16 %v985_v25, %v973_v24  ;;  %v810_v40 = vunpack.c.l.bf16 %v759_v29  ;;  %v3758_v12 = vld [vmem:[#allocation7 + $0x8] sm:$0xff]  ;;  %v3760_v13 = vld [vmem:[#allocation7 + $0x38] sm:$0xff] }
 0x154   :  { %v635_v19 = vpop.f32.mrb[11].mxu0  ;;  %2241 = vmatmul.mubr.bf16.vlgmr.msra.gmra.mrb[12].mxu1 %v1008_v2  ;;  %v852_v42 = vunpack.c.l.bf16 %v3705_v50  ;;  %v378_v45 = vsub.s32 2, %v3668_v53  ;;  %v799_v46 = vunpack.c.h.bf16 %v753_v28  ;;  %v811_v47 = vunpack.c.h.bf16 %v759_v29  ;;  %v3189_v50 = vld [vmem:[#allocation8 + $0x130] ss:$8 sps:$4 sm:$0xff]   ;;  %v3195_v16 = vld [vmem:[#allocation8 + $0x140] ss:$8 sps:$4 sm:$0xff]  }
 0x155   :  { %2280 = vmatpush1.bf16.msra.mxu1 %v3171_v9  ;;  %2250 = vmatprep.mubr.bf16.mxu1 %v1021_v15  ;;  %v2730_v32 = vmul.f32 -1.442695, %v633_v56  ;;  %v865_v57 = vunpack.c.h.bf16 %v3728_v35  ;;  %v823_v58 = vunpack.c.h.bf16 %v3730_v36  ;;  %v835_v59 = vunpack.c.h.bf16 %v3732_v37  ;;  %v3198_v18 = vld [vmem:[#allocation8 + $0x400] ss:$8 sps:$4 sm:$0xff]   ;;  %v3206_v28 = vld [vmem:[#allocation8 + $0x414] ss:$8 sps:$4 sm:$0xff]  }
 0x156   :  { %2281 = vmatprep.subr.bf16.mxu1 %v3179_v14  ;;  %v972_v0 = vmul.f32 %v3696_v38, %v840_v41  ;;  %v984_v1 = vmul.f32 %v3696_v38, %v852_v42  ;;  %v379_v4 = vrot.slane %v3673_v55, %v378_v45  ;;  %v3762_v14 = vld [vmem:[#allocation7 + $0xd8] sm:$0xff]  ;;  %v864_v19 = vunpack.c.l.bf16 %v3728_v35 }
 0x157   :  { %3395 = vpow2.f32 %v2730_v32  ;;  %v997_v9 = vmul.f32 %v3699_v44, %v865_v57  ;;  %v834_v24 = vunpack.c.l.bf16 %v3732_v37  ;;  %v795_v56 = vunpack.c.h.bf16 %v3758_v12 }
 0x158   :  { %v1032_v44 = vpack.c.bf16 %v984_v1, %v972_v0  ;;  %v508_v25 = vadd.f32 %v3681_v60, %v379_v4  ;;  %v807_v29 = vunpack.c.h.bf16 %v3760_v13  ;;  %v859_v35 = vunpack.c.h.bf16 %v3765_v20  ;;  %v3201_v60 = vld [vmem:[#allocation8 + $0x150] ss:$8 sps:$4 sm:$0xff]   ;;  %v3218_v4 = vld [vmem:[#allocation8 + $0x434] ss:$8 sps:$4 sm:$0xff]  }
 0x159   :  { %2282 = vmatpush1.bf16.msra.mxu1 %v3177_v22  ;;  %v822_v22 = vunpack.c.l.bf16 %v3730_v36  ;;  %v3204_v36 = vld [vmem:[#allocation8 + $0x410] ss:$8 sps:$4 sm:$0xff]   ;;  %v996_v41 = vmul.f32 %v3696_v38, %v864_v19  ;;  %v3210_v38 = vld [vmem:[#allocation8 + $0x420] ss:$8 sps:$4 sm:$0xff]   ;;  %v846_v1 = vunpack.c.l.bf16 %v3762_v14 }
 0x15a   :  { %2283 = vmatprep.subr.bf16.mxu1 %v3185_v27  ;;  %v3203_v27 = vld [vmem:[#allocation8 + $0x154] ss:$8 sps:$4 sm:$0xff]  }
 0x15b   :  { %v3390_v43 = vpop.eup %3389 }
 0x15c   :  { %v3392_v48 = vpop.eup %3391  ;;  %v3738_v52 = vrot.slane %v3390_v43, %v3671_v54  ;;  %2251 = vmatmul.mubr.bf16.gmra.mrb[16].mxu1 %v1020_v31 }
 0x15d   :  { %v3744_v49 = vrot.slane %v3392_v48, %v3671_v54  ;;  %2284 = vmatpush1.bf16.msra.mxu1 %v3183_v30  ;;  %2260 = vmatprep.mubr.bf16.mxu1 %v1033_v33  ;;  %v3394_v15 = vpop.eup %3393  ;;  %v847_v30 = vunpack.c.h.bf16 %v3762_v14  ;;  %v1045_v33 = vpack.c.bf16 %v997_v9, %v997_v9 }
 0x15e   :  { %2285 = vmatprep.subr.bf16.mxu1 %v3191_v39  ;;  %v930_v2 = vmul.f32 %v3738_v52, %v798_v34  ;;  %v942_v3 = vmul.f32 %v3738_v52, %v810_v40  ;;  %v3774_v32 = vrot.slane %v3394_v15, %v3671_v54  ;;  %v3209_v39 = vld [vmem:[#allocation8 + $0x164] ss:$8 sps:$4 sm:$0xff]   ;;  %v954_v42 = vmul.f32 %v3738_v52, %v822_v22  ;;  %v3219_v22 = vld [vmem:[#allocation8 + $0x180] ss:$8 sps:$4 sm:$0xff]  }
 0x15f   :  { %v931_v6 = vmul.f32 %v3744_v49, %v799_v46  ;;  %v943_v8 = vmul.f32 %v3744_v49, %v811_v47  ;;  %v955_v10 = vmul.f32 %v3744_v49, %v823_v58  ;;  %v967_v11 = vmul.f32 %v3744_v49, %v835_v59  ;;  %v3212_v40 = vld [vmem:[#allocation8 + $0x424] ss:$8 sps:$4 sm:$0xff]   ;;  %v3207_v59 = vld [vmem:[#allocation8 + $0x160] ss:$8 sps:$4 sm:$0xff]  }
 0x160   :  { %v1014_v21 = vpack.c.bf16 %v942_v3, %v930_v2  ;;  %v966_v43 = vmul.f32 %v3738_v52, %v834_v24  ;;  %v2723_v46 = vmul.f32 -1.442695, %v508_v25  ;;  %v927_v47 = vmul.f32 %v3774_v32, %v795_v56  ;;  %v3215_v3 = vld [vmem:[#allocation8 + $0x174] ss:$8 sps:$4 sm:$0xff]   ;;  %v3221_v15 = vld [vmem:[#allocation8 + $0x184] ss:$8 sps:$4 sm:$0xff]  }
 0x161   :  { %2286 = vmatpush1.bf16.msra.mxu1 %v3189_v50  ;;  %v1015_v17 = vpack.c.bf16 %v943_v8, %v931_v6  ;;  %v3396_v31 = vpop.eup %3395  ;;  %v1027_v34 = vpack.c.bf16 %v967_v11, %v955_v10  ;;  %v939_v48 = vmul.f32 %v3774_v32, %v807_v29  ;;  %v979_v57 = vmul.f32 %v3744_v49, %v847_v30  ;;  %v789_v50 = vld [vmem:[#allocation7 + $0x138] sm:$0x11]  ;;  %v3213_v10 = vld [vmem:[#allocation8 + $0x170] ss:$8 sps:$4 sm:$0xff]   ;;  %v3230_v56 = vld [vmem:[#allocation8 + $0x454] ss:$8 sps:$4 sm:$0xff]  }
 0x162   :  { %2287 = vmatprep.subr.bf16.mxu1 %v3197_v61  ;;  %v723_v37 = vadd.f32 1.0, %v3396_v31  ;;  %v991_v58 = vmul.f32 %v3744_v49, %v859_v35  ;;  %v1044_v61 = vpack.c.bf16 %v996_v41, %v996_v41  ;;  %v1026_v0 = vpack.c.bf16 %v966_v43, %v954_v42  ;;  %v3216_v11 = vld [vmem:[#allocation8 + $0x430] ss:$8 sps:$4 sm:$0xff]   ;;  %v3222_v24 = vld [vmem:[#allocation8 + $0x440] ss:$8 sps:$4 sm:$0xff]  }
 0x163   :  { %2453 = vmatprep.mubr.bf16.mxu0 %v1015_v17  ;;  %v858_v2 = vunpack.c.l.bf16 %v3765_v20  ;;  %v1011_v6 = vpack.c.bf16 %v939_v48, %v927_v47  ;;  %v871_v9 = vunpack.c.h.bf16 %v789_v50  ;;  %v978_v14 = vmul.f32 %v3738_v52, %v846_v1  ;;  %v3791_v20 = vld [vmem:[#allocation7 + $0x20] sm:$0xff]  ;;  %v3231_v47 = vld [vmem:[#allocation8 + $0x1a0] ss:$8 sps:$4 sm:$0xff]   ;;  %v3248_v1 = vld [vmem:[#allocation8 + $0x484] ss:$8 sps:$4 sm:$0xff]  }
 0x164   :  { %2261 = vmatmul.mubr.bf16.gmra.mrb[20].mxu1 %v1032_v44  ;;  %2454 = vmatmul.mubr.bf16.vlgmr.msra.gmra.mrb[12].mxu0 %v1014_v21  ;;  %3397 = vrcp.f32 %v723_v37  ;;  %v1039_v8 = vpack.c.bf16 %v991_v58, %v979_v57  ;;  %v3793_v44 = vld [vmem:[#allocation7 + $0x50] sm:$0xff]  ;;  %v3225_v35 = vld [vmem:[#allocation8 + $0x190] ss:$8 sps:$4 sm:$0xff]   ;;  %v3239_v58 = vld [vmem:[#allocation8 + $0x1b4] ss:$8 sps:$4 sm:$0xff]  }
 0x165   :  { %2288 = vmatpush1.bf16.msra.mxu1 %v3195_v16  ;;  %2493 = vmatpush1.bf16.msra.mxu0 %v3198_v18  ;;  %3399 = vpow2.f32 %v2723_v46  ;;  %v3224_v16 = vld [vmem:[#allocation8 + $0x444] ss:$8 sps:$4 sm:$0xff]   ;;  %v990_v17 = vmul.f32 %v3738_v52, %v858_v2  ;;  %v403_v18 = vrot.slane %v3711_v62, %v3671_v54  ;;  %v1003_v19 = vmul.f32 %v3744_v49, %v871_v9  ;;  %v3234_v48 = vld [vmem:[#allocation8 + $0x460] ss:$8 sps:$4 sm:$0xff]   ;;  %v3249_v9 = vld [vmem:[#allocation8 + $0x1d0] ss:$8 sps:$4 sm:$0xff]  }
 0x166   :  { %2270 = vmatprep.mubr.bf16.mxu1 %v1045_v33  ;;  %2463 = vmatprep.mubr.bf16.mxu0 %v1027_v34  ;;  %v801_v49 = vunpack.c.h.bf16 %v3791_v20  ;;  %v813_v31 = vunpack.c.h.bf16 %v3793_v44  ;;  %v390_v33 = vsub.s32 5, %v3668_v53  ;;  %v3233_v37 = vld [vmem:[#allocation8 + $0x1a4] ss:$8 sps:$4 sm:$0xff]  }
 0x167   :  { %2289 = vmatprep.subr.bf16.mxu1 %v3203_v27  ;;  %2494 = vmatprep.subr.bf16.mxu0 %v3206_v28  ;;  %v1038_v25 = vpack.c.bf16 %v990_v17, %v978_v14  ;;  %v3227_v27 = vld [vmem:[#allocation8 + $0x194] ss:$8 sps:$4 sm:$0xff]   ;;  %v870_v28 = vunpack.c.l.bf16 %v789_v50  ;;  %v631_v29 = vadd.f32 %v3717_v5, %v403_v18  ;;  %v1051_v34 = vpack.c.bf16 %v1003_v19, %v1003_v19  ;;  %v3236_v5 = vld [vmem:[#allocation8 + $0x464] ss:$8 sps:$4 sm:$0xff]   ;;  %v3237_v50 = vld [vmem:[#allocation8 + $0x1b0] ss:$8 sps:$4 sm:$0xff]  }
 0x168   :  { %v391_v43 = vrot.slane %v3673_v55, %v390_v33  ;;  %v763_v17 = vld [vmem:[#allocation7 + $0x68] sm:$0xff]  ;;  %v769_v18 = vld [vmem:[#allocation7 + $0x98] sm:$0xff]  ;;  %v415_v19 = vrot.slane %v3711_v62, %v382_v7 }
 0x169   :  { %2290 = vmatpush1.bf16.msra.mxu1 %v3201_v60  ;;  %2495 = vmatpush1.bf16.msra.mxu0 %v3204_v36  ;;  %v3228_v60 = vld [vmem:[#allocation8 + $0x450] ss:$8 sps:$4 sm:$0xff]  }
 0x16a   :  { %2291 = vmatprep.subr.bf16.mxu1 %v3209_v39  ;;  %2496 = vmatprep.subr.bf16.mxu0 %v3212_v40  ;;  %v1002_v39 = vmul.f32 %v3738_v52, %v870_v28  ;;  %v2729_v40 = vmul.f32 -1.442695, %v631_v29  ;;  %v3263_v28 = vld [vmem:[#allocation8 + $0x1f4] ss:$8 sps:$4 sm:$0xff]   ;;  %v819_v29 = vunpack.c.h.bf16 %v763_v17  ;;  %v674_v7 = vadd.f32 %v3713_v63, %v415_v19  ;;  %v3264_v33 = vld [vmem:[#allocation8 + $0x4b0] ss:$8 sps:$4 sm:$0xff]  }
 0x16b   :  { %v3822_v63 = vld [vmem:[#allocation7 + $0xf8] sm:$0xff] }
 0x16c   :  { %2271 = vmatmul.mubr.bf16.gmra.mrb[24].mxu1 %v1044_v61  ;;  %2464 = vmatmul.mubr.bf16.gmra.mrb[16].mxu0 %v1026_v0  ;;  %v1050_v57 = vpack.c.bf16 %v1002_v39, %v1002_v39  ;;  %3401 = vpow2.f32 %v2729_v40  ;;  %v3240_v61 = vld [vmem:[#allocation8 + $0x470] ss:$8 sps:$4 sm:$0xff]   ;;  %v3245_v0 = vld [vmem:[#allocation8 + $0x1c4] ss:$8 sps:$4 sm:$0xff]   ;;  %v2732_v39 = vmul.f32 -1.442695, %v674_v7 }
 0x16d   :  { %2292 = vmatpush1.bf16.msra.mxu1 %v3207_v59  ;;  %2497 = vmatpush1.bf16.msra.mxu0 %v3210_v38  ;;  %v3242_v59 = vld [vmem:[#allocation8 + $0x474] ss:$8 sps:$4 sm:$0xff]   ;;  %v551_v38 = vadd.f32 %v3693_v26, %v391_v43  ;;  %v3270_v43 = vld [vmem:[#allocation8 + $0x4c0] ss:$8 sps:$4 sm:$0xff]  }
 0x16e   :  { %2311 = vmatprep.mubr.bf16.mxu1 %v1011_v6  ;;  %2473 = vmatprep.mubr.bf16.mxu0 %v1039_v8  ;;  %v3398_v21 = vpop.eup %3397  ;;  %v3251_v6 = vld [vmem:[#allocation8 + $0x1d4] ss:$8 sps:$4 sm:$0xff]  }
 0x16f   :  { %2293 = vmatprep.subr.bf16.mxu1 %v3215_v3  ;;  %2498 = vmatprep.subr.bf16.mxu0 %v3218_v4  ;;  %v3797_v30 = vrot.slane %v3398_v21, %v3671_v54  ;;  %v3400_v36 = vpop.eup %3399  ;;  %v2726_v2 = vmul.f32 -1.442695, %v551_v38  ;;  %v3243_v3 = vld [vmem:[#allocation8 + $0x1c0] ss:$8 sps:$4 sm:$0xff]   ;;  %v3254_v26 = vld [vmem:[#allocation8 + $0x494] ss:$8 sps:$4 sm:$0xff]  }
 0x170   :  { %v716_v46 = vadd.f32 1.0, %v3400_v36  ;;  %v3246_v4 = vld [vmem:[#allocation8 + $0x480] ss:$8 sps:$4 sm:$0xff]   ;;  %v951_v36 = vmul.f32 %v3774_v32, %v819_v29  ;;  %v3273_v38 = vld [vmem:[#allocation8 + $0x210] ss:$8 sps:$4 sm:$0xff]  }
 0x171   :  { %2294 = vmatpush1.bf16.msra.mxu1 %v3213_v10  ;;  %2499 = vmatpush1.bf16.msra.mxu0 %v3216_v11  ;;  %v933_v41 = vmul.f32 %v3797_v30, %v801_v49  ;;  %v945_v42 = vmul.f32 %v3797_v30, %v813_v31  ;;  %v3252_v10 = vld [vmem:[#allocation8 + $0x490] ss:$8 sps:$4 sm:$0xff]   ;;  %v3257_v11 = vld [vmem:[#allocation8 + $0x1e4] ss:$8 sps:$4 sm:$0xff]   ;;  %v3255_v21 = vld [vmem:[#allocation8 + $0x1e0] ss:$8 sps:$4 sm:$0xff]   ;;  %v831_v49 = vunpack.c.h.bf16 %v769_v18 }
 0x172   :  { %2295 = vmatprep.subr.bf16.mxu1 %v3221_v15  ;;  %2500 = vmatprep.subr.bf16.mxu0 %v3224_v16  ;;  %3403 = vrcp.f32 %v716_v46  ;;  %v3260_v15 = vld [vmem:[#allocation8 + $0x4a4] ss:$8 sps:$4 sm:$0xff]   ;;  %v3261_v31 = vld [vmem:[#allocation8 + $0x1f0] ss:$8 sps:$4 sm:$0xff]   ;;  %v3275_v46 = vld [vmem:[#allocation8 + $0x214] ss:$8 sps:$4 sm:$0xff]  }
 0x173   :  { %v1017_v52 = vpack.c.bf16 %v945_v42, %v933_v41  ;;  %3405 = vpow2.f32 %v2726_v2  ;;  %v3267_v41 = vld [vmem:[#allocation8 + $0x200] ss:$8 sps:$4 sm:$0xff]   ;;  %v3281_v2 = vld [vmem:[#allocation8 + $0x224] ss:$8 sps:$4 sm:$0xff]  }
 0x174   :  { %2474 = vmatmul.mubr.bf16.gmra.mrb[20].mxu0 %v1038_v25  ;;  %v794_v25 = vunpack.c.l.bf16 %v3758_v12 }
 0x175   :  { %2296 = vmatpush1.bf16.msra.mxu1 %v3219_v22  ;;  %2501 = vmatpush1.bf16.msra.mxu0 %v3222_v24  ;;  %v3258_v22 = vld [vmem:[#allocation8 + $0x4a0] ss:$8 sps:$4 sm:$0xff]  }
 0x176   :  { %2483 = vmatprep.mubr.bf16.mxu0 %v1051_v34  ;;  %2297 = vmatprep.subr.bf16.mxu1 %v3227_v27  ;;  %v3402_v8 = vpop.eup %3401  ;;  %v806_v27 = vunpack.c.l.bf16 %v3760_v13  ;;  %v3269_v13 = vld [vmem:[#allocation8 + $0x204] ss:$8 sps:$4 sm:$0xff]  }
 0x177   :  { %2502 = vmatprep.subr.bf16.mxu0 %v3230_v56  ;;  %v722_v14 = vadd.f32 1.0, %v3402_v8  ;;  %v3266_v56 = vld [vmem:[#allocation8 + $0x4b4] ss:$8 sps:$4 sm:$0xff]  }
 0x179   :  { %2298 = vmatpush1.bf16.msra.mxu1 %v3225_v35  ;;  %2503 = vmatpush1.bf16.msra.mxu0 %v3228_v60  ;;  %3407 = vrcp.f32 %v722_v14  ;;  %v3272_v60 = vld [vmem:[#allocation8 + $0x4c4] ss:$8 sps:$4 sm:$0xff]  }
 0x17a   :  { %2299 = vmatprep.subr.bf16.mxu1 %v3233_v37  ;;  %2504 = vmatprep.subr.bf16.mxu0 %v3236_v5  ;;  %v963_v37 = vmul.f32 %v3774_v32, %v831_v49  ;;  %v3820_v5 = vld [vmem:[#allocation7 + $0xc8] sm:$0xff]  ;;  %3409 = vpow2.f32 %v2732_v39  ;;  %v3857_v39 = vld [vmem:[#allocation7 + $0x40] sm:$0xff] }
 0x17b   :  { %v842_v19 = vunpack.c.l.bf16 %v3820_v5 }
 0x17c   :  { %2484 = vmatmul.mubr.bf16.gmra.mrb[24].mxu0 %v1050_v57  ;;  %v3404_v16 = vpop.eup %3403  ;;  %v1023_v57 = vpack.c.bf16 %v963_v37, %v951_v36  ;;  %v3852_v36 = vld [vmem:[#allocation7 + $0x10] sm:$0xff] }
 0x17d   :  { %2300 = vmatpush1.bf16.msra.mxu1 %v3231_v47  ;;  %2505 = vmatpush1.bf16.msra.mxu0 %v3234_v48  ;;  %v3811_v24 = vrot.slane %v3404_v16, %v3671_v54  ;;  %v3406_v34 = vpop.eup %3405  ;;  %v818_v47 = vunpack.c.l.bf16 %v763_v17  ;;  %v830_v48 = vunpack.c.l.bf16 %v769_v18  ;;  %v3839_v16 = vld [vmem:[#allocation7 + $0xb0] sm:$0xff]  ;;  %v3287_v18 = vld [vmem:[#allocation8 + $0x234] ss:$8 sps:$4 sm:$0xff]  }
 0x17e   :  { %2301 = vmatprep.subr.bf16.mxu1 %v3239_v58  ;;  %2506 = vmatprep.subr.bf16.mxu0 %v3242_v59  ;;  %v719_v40 = vadd.f32 1.0, %v3406_v34  ;;  %v3278_v58 = vld [vmem:[#allocation8 + $0x4d4] ss:$8 sps:$4 sm:$0xff]   ;;  %v843_v59 = vunpack.c.h.bf16 %v3820_v5  ;;  %v3282_v17 = vld [vmem:[#allocation8 + $0x4e0] ss:$8 sps:$4 sm:$0xff]  }
 0x17f   :  { %2524 = vmatprep.mubr.bf16.mxu0 %v1017_v52  ;;  %v926_v35 = vmul.f32 %v3811_v24, %v794_v25  ;;  %v938_v12 = vmul.f32 %v3811_v24, %v806_v27  ;;  %v855_v52 = vunpack.c.h.bf16 %v3822_v63  ;;  %v3290_v25 = vld [vmem:[#allocation8 + $0x4f4] ss:$8 sps:$4 sm:$0xff]  }
 0x180   :  { %3411 = vrcp.f32 %v719_v40 }
 0x181   :  { %2302 = vmatpush1.bf16.msra.mxu1 %v3237_v50  ;;  %2507 = vmatpush1.bf16.msra.mxu0 %v3240_v61  ;;  %v1010_v42 = vpack.c.bf16 %v938_v12, %v926_v35  ;;  %v3276_v61 = vld [vmem:[#allocation8 + $0x4d0] ss:$8 sps:$4 sm:$0xff]   ;;  %v3293_v35 = vld [vmem:[#allocation8 + $0x244] ss:$8 sps:$4 sm:$0xff]  }
 0x182   :  { %2303 = vmatprep.subr.bf16.mxu1 %v3245_v0  ;;  %2508 = vmatprep.subr.bf16.mxu0 %v3248_v1  ;;  %v950_v0 = vmul.f32 %v3811_v24, %v818_v47  ;;  %v962_v1 = vmul.f32 %v3811_v24, %v830_v48  ;;  %v3291_v47 = vld [vmem:[#allocation8 + $0x240] ss:$8 sps:$4 sm:$0xff]   ;;  %v797_v48 = vunpack.c.h.bf16 %v3852_v36 }
 0x183   :  { %v3408_v50 = vpop.eup %3407 }
 0x184   :  { %v3833_v8 = vrot.slane %v3408_v50, %v3671_v54  ;;  %v1022_v14 = vpack.c.bf16 %v962_v1, %v950_v0  ;;  %v3410_v7 = vpop.eup %3409  ;;  %v809_v50 = vunpack.c.h.bf16 %v3857_v39  ;;  %v3302_v1 = vld [vmem:[#allocation8 + $0x514] ss:$8 sps:$4 sm:$0xff]  }
 0x185   :  { %2304 = vmatpush1.bf16.msra.mxu1 %v3243_v3  ;;  %2509 = vmatpush1.bf16.msra.mxu0 %v3246_v4  ;;  %v3284_v3 = vld [vmem:[#allocation8 + $0x4e4] ss:$8 sps:$4 sm:$0xff]   ;;  %v975_v4 = vmul.f32 %v3774_v32, %v843_v59  ;;  %v3299_v59 = vld [vmem:[#allocation8 + $0x254] ss:$8 sps:$4 sm:$0xff]  }
 0x186   :  { %2305 = vmatprep.subr.bf16.mxu1 %v3251_v6  ;;  %2510 = vmatprep.subr.bf16.mxu0 %v3254_v26  ;;  %v987_v6 = vmul.f32 %v3774_v32, %v855_v52  ;;  %v3830_v26 = vld [vmem:[#allocation7 + $0x128] sm:$0x11] }
 0x189   :  { %2306 = vmatpush1.bf16.msra.mxu1 %v3249_v9  ;;  %2511 = vmatpush1.bf16.msra.mxu0 %v3252_v10  ;;  %v3279_v9 = vld [vmem:[#allocation8 + $0x220] ss:$8 sps:$4 sm:$0xff]   ;;  %v800_v10 = vunpack.c.l.bf16 %v3791_v20  ;;  %v867_v20 = vunpack.c.h.bf16 %v3830_v26 }
 0x18a   :  { %2307 = vmatprep.subr.bf16.mxu1 %v3257_v11  ;;  %2512 = vmatprep.subr.bf16.mxu0 %v3260_v15  ;;  %v812_v11 = vunpack.c.l.bf16 %v3793_v44  ;;  %v3837_v15 = vld [vmem:[#allocation7 + $0x80] sm:$0xff]  ;;  %v386_v44 = vsub.s32 4, %v3668_v53  ;;  %v3412_v12 = vpop.eup %3411 }
 0x18b   :  { %v825_v27 = vunpack.c.h.bf16 %v3837_v15  ;;  %v932_v29 = vmul.f32 %v3833_v8, %v800_v10  ;;  %v824_v52 = vunpack.c.l.bf16 %v3837_v15 }
 0x18c   :  { %v944_v49 = vmul.f32 %v3833_v8, %v812_v11  ;;  %v387_v37 = vrot.slane %v3673_v55, %v386_v44  ;;  %v866_v55 = vunpack.c.l.bf16 %v3830_v26  ;;  %v3311_v44 = vld [vmem:[#allocation8 + $0x274] ss:$8 sps:$4 sm:$0xff]  }
 0x18d   :  { %2308 = vmatpush1.bf16.msra.mxu1 %v3255_v21  ;;  %2513 = vmatpush1.bf16.msra.mxu0 %v3258_v22  ;;  %v854_v21 = vunpack.c.l.bf16 %v3822_v63  ;;  %v1035_v22 = vpack.c.bf16 %v987_v6, %v975_v4  ;;  %v957_v5 = vmul.f32 %v3797_v30, %v825_v27  ;;  %v3297_v4 = vld [vmem:[#allocation8 + $0x250] ss:$8 sps:$4 sm:$0xff]   ;;  %v956_v10 = vmul.f32 %v3833_v8, %v824_v52 }
 0x18e   :  { %2309 = vmatprep.subr.bf16.mxu1 %v3263_v28  ;;  %2514 = vmatprep.subr.bf16.mxu0 %v3266_v56  ;;  %v837_v28 = vunpack.c.h.bf16 %v3839_v16  ;;  %v3285_v56 = vld [vmem:[#allocation8 + $0x230] ss:$8 sps:$4 sm:$0xff]   ;;  %v1016_v40 = vpack.c.bf16 %v944_v49, %v932_v29  ;;  %v998_v6 = vmul.f32 %v3811_v24, %v866_v55  ;;  %v3314_v29 = vld [vmem:[#allocation8 + $0x534] ss:$8 sps:$4 sm:$0xff]  }
 0x18f   :  { %v986_v34 = vmul.f32 %v3811_v24, %v854_v21  ;;  %v3303_v21 = vld [vmem:[#allocation8 + $0x260] ss:$8 sps:$4 sm:$0xff]   ;;  %v3323_v55 = vld [vmem:[#allocation8 + $0x294] ss:$8 sps:$4 sm:$0xff]   ;;  %v3324_v52 = vld [vmem:[#allocation8 + $0x550] ss:$8 sps:$4 sm:$0xff]  }
 0x190   :  { %v969_v63 = vmul.f32 %v3797_v30, %v837_v28 }
 0x191   :  { %2310 = vmatpush1.bf16.msra.mxu1 %v3261_v31  ;;  %2515 = vmatpush1.bf16.msra.mxu0 %v3264_v33  ;;  %v3288_v31 = vld [vmem:[#allocation8 + $0x4f0] ss:$8 sps:$4 sm:$0xff]   ;;  %v974_v33 = vmul.f32 %v3811_v24, %v842_v19  ;;  %v1046_v19 = vpack.c.bf16 %v998_v6, %v998_v6  ;;  %v3335_v6 = vld [vmem:[#allocation8 + $0x2b4] ss:$8 sps:$4 sm:$0xff]  }
 0x192   :  { %2350 = vmatprep.subr.bf16.mxu1 %v3269_v13  ;;  %2516 = vmatprep.subr.bf16.mxu0 %v3272_v60  ;;  %v3296_v13 = vld [vmem:[#allocation8 + $0x504] ss:$8 sps:$4 sm:$0xff]   ;;  %v999_v60 = vmul.f32 %v3774_v32, %v867_v20  ;;  %v1029_v0 = vpack.c.bf16 %v969_v63, %v957_v5  ;;  %v3881_v24 = vld [vmem:[#allocation7 + $0x140] sm:$0x11]  ;;  %v3315_v63 = vld [vmem:[#allocation8 + $0x280] ss:$8 sps:$4 sm:$0xff]  }
 0x193   :  { %v1034_v32 = vpack.c.bf16 %v986_v34, %v974_v33  ;;  %v873_v49 = vunpack.c.h.bf16 %v3881_v24  ;;  %v3317_v34 = vld [vmem:[#allocation8 + $0x284] ss:$8 sps:$4 sm:$0xff]  }
 0x194   :  { %2312 = vmatmul.mubr.bf16.vlgmr.msra.gmra.mrb[12].mxu1 %v1010_v42  ;;  %v3861_v42 = vld [vmem:[#allocation7 + $0x110] sm:$0xff] }
 0x195   :  { %2321 = vmatprep.mubr.bf16.mxu1 %v1023_v57  ;;  %2351 = vmatpush1.bf16.msra.mxu1 %v3267_v41  ;;  %v3859_v41 = vld [vmem:[#allocation7 + $0xe0] sm:$0xff]  ;;  %v3294_v57 = vld [vmem:[#allocation8 + $0x500] ss:$8 sps:$4 sm:$0xff]   ;;  %v860_v28 = vunpack.c.l.bf16 %v3861_v42  ;;  %v1005_v5 = vmul.f32 %v3797_v30, %v873_v49 }
 0x196   :  { %2517 = vmatpush1.bf16.msra.mxu0 %v3270_v43  ;;  %2352 = vmatprep.subr.bf16.mxu1 %v3275_v46  ;;  %v725_v43 = vadd.f32 1.0, %v3410_v7  ;;  %v3864_v46 = vrot.slane %v3412_v12, %v3671_v54  ;;  %v848_v27 = vunpack.c.l.bf16 %v3859_v41  ;;  %v3309_v7 = vld [vmem:[#allocation8 + $0x270] ss:$8 sps:$4 sm:$0xff]   ;;  %v3354_v49 = vld [vmem:[#allocation8 + $0x5a0] ss:$8 sps:$4 sm:$0xff]  }
 0x197   :  { %2518 = vmatprep.subr.bf16.mxu0 %v3278_v58  ;;  %v1047_v58 = vpack.c.bf16 %v999_v60, %v999_v60  ;;  %v992_v12 = vmul.f32 %v3833_v8, %v860_v28  ;;  %v3890_v60 = vld [vmem:[#allocation7 + $0x58] sm:$0xff]  ;;  %v796_v28 = vunpack.c.l.bf16 %v3852_v36  ;;  %v3360_v36 = vld [vmem:[#allocation8 + $0x5b0] ss:$8 sps:$4 sm:$0xff]  }
 0x198   :  { %3413 = vrcp.f32 %v725_v43  ;;  %v929_v26 = vmul.f32 %v3864_v46, %v797_v48  ;;  %v941_v15 = vmul.f32 %v3864_v46, %v809_v50  ;;  %v815_v43 = vunpack.c.h.bf16 %v3890_v60 }
 0x199   :  { %2353 = vmatpush1.bf16.msra.mxu1 %v3273_v38  ;;  %v836_v38 = vunpack.c.l.bf16 %v3839_v16  ;;  %v1053_v48 = vpack.c.bf16 %v1005_v5, %v1005_v5 }
 0x19a   :  { %2519 = vmatpush1.bf16.msra.mxu0 %v3276_v61  ;;  %2354 = vmatprep.subr.bf16.mxu1 %v3281_v2  ;;  %v549_v61 = vadd.f32 %v3691_v23, %v387_v37  ;;  %v849_v2 = vunpack.c.h.bf16 %v3859_v41  ;;  %v3300_v23 = vld [vmem:[#allocation8 + $0x510] ss:$8 sps:$4 sm:$0xff]   ;;  %v1013_v20 = vpack.c.bf16 %v941_v15, %v929_v26  ;;  %v3320_v37 = vld [vmem:[#allocation8 + $0x544] ss:$8 sps:$4 sm:$0xff]   ;;  %v3338_v26 = vld [vmem:[#allocation8 + $0x574] ss:$8 sps:$4 sm:$0xff]  }
 0x19b   :  { %2520 = vmatprep.subr.bf16.mxu0 %v3284_v3  ;;  %v861_v3 = vunpack.c.h.bf16 %v3861_v42  ;;  %v968_v11 = vmul.f32 %v3833_v8, %v836_v38  ;;  %v3329_v38 = vld [vmem:[#allocation8 + $0x2a4] ss:$8 sps:$4 sm:$0xff]   ;;  %v3342_v15 = vld [vmem:[#allocation8 + $0x580] ss:$8 sps:$4 sm:$0xff]  }
 0x19c   :  { %2322 = vmatmul.mubr.bf16.gmra.mrb[16].mxu1 %v1022_v14  ;;  %v2725_v16 = vmul.f32 -1.442695, %v549_v61  ;;  %v3308_v14 = vld [vmem:[#allocation8 + $0x524] ss:$8 sps:$4 sm:$0xff]  }
 0x19d   :  { %2331 = vmatprep.mubr.bf16.mxu1 %v1035_v22  ;;  %2355 = vmatpush1.bf16.msra.mxu1 %v3279_v9  ;;  %v3305_v9 = vld [vmem:[#allocation8 + $0x264] ss:$8 sps:$4 sm:$0xff]   ;;  %v1028_v22 = vpack.c.bf16 %v968_v11, %v956_v10  ;;  %v3339_v11 = vld [vmem:[#allocation8 + $0x2c0] ss:$8 sps:$4 sm:$0xff]  }
 0x19e   :  { %2521 = vmatpush1.bf16.msra.mxu0 %v3282_v17  ;;  %2356 = vmatprep.subr.bf16.mxu1 %v3287_v18  ;;  %v981_v17 = vmul.f32 %v3797_v30, %v849_v2  ;;  %v993_v18 = vmul.f32 %v3797_v30, %v861_v3  ;;  %3415 = vpow2.f32 %v2725_v16  ;;  %v872_v30 = vunpack.c.l.bf16 %v3881_v24  ;;  %v3332_v61 = vld [vmem:[#allocation8 + $0x564] ss:$8 sps:$4 sm:$0xff]   ;;  %v3327_v2 = vld [vmem:[#allocation8 + $0x2a0] ss:$8 sps:$4 sm:$0xff]   ;;  %v3347_v16 = vld [vmem:[#allocation8 + $0x2d4] ss:$8 sps:$4 sm:$0xff]  }
 0x19f   :  { %2522 = vmatprep.subr.bf16.mxu0 %v3290_v25  ;;  %v3306_v25 = vld [vmem:[#allocation8 + $0x520] ss:$8 sps:$4 sm:$0xff]   ;;  %v3344_v10 = vld [vmem:[#allocation8 + $0x584] ss:$8 sps:$4 sm:$0xff]   ;;  %v3348_v24 = vld [vmem:[#allocation8 + $0x590] ss:$8 sps:$4 sm:$0xff]  }
 0x1a0   :  { %v1004_v50 = vmul.f32 %v3833_v8, %v872_v30 }
 0x1a1   :  { %2357 = vmatpush1.bf16.msra.mxu1 %v3285_v56  ;;  %v1041_v56 = vpack.c.bf16 %v993_v18, %v981_v17  ;;  %v3345_v17 = vld [vmem:[#allocation8 + $0x2d0] ss:$8 sps:$4 sm:$0xff]  }
 0x1a2   :  { %2523 = vmatpush1.bf16.msra.mxu0 %v3288_v31  ;;  %2358 = vmatprep.subr.bf16.mxu1 %v3293_v35  ;;  %v3312_v31 = vld [vmem:[#allocation8 + $0x530] ss:$8 sps:$4 sm:$0xff]   ;;  %v3414_v33 = vpop.eup %3413  ;;  %v980_v35 = vmul.f32 %v3833_v8, %v848_v27 }
 0x1a3   :  { %2563 = vmatprep.subr.bf16.mxu0 %v3296_v13  ;;  %v3888_v13 = vld [vmem:[#allocation7 + $0x28] sm:$0xff]  ;;  %v3897_v41 = vrot.slane %v3414_v33, %v3671_v54 }
 0x1a4   :  { %2332 = vmatmul.mubr.bf16.gmra.mrb[20].mxu1 %v1034_v32  ;;  %v803_v42 = vunpack.c.h.bf16 %v3888_v13  ;;  %v1040_v32 = vpack.c.bf16 %v992_v12, %v980_v35  ;;  %v3336_v8 = vld [vmem:[#allocation8 + $0x570] ss:$8 sps:$4 sm:$0xff]  }
 0x1a5   :  { %2525 = vmatmul.mubr.bf16.vlgmr.msra.gmra.mrb[12].mxu0 %v1016_v40  ;;  %2341 = vmatprep.mubr.bf16.mxu1 %v1047_v58  ;;  %v411_v40 = vrot.slane %v3711_v62, %v378_v45  ;;  %v3321_v62 = vld [vmem:[#allocation8 + $0x290] ss:$8 sps:$4 sm:$0xff]  }
 0x1a6   :  { %2359 = vmatpush1.bf16.msra.mxu1 %v3291_v47  ;;  %2534 = vmatprep.mubr.bf16.mxu0 %v1029_v0  ;;  %v3318_v47 = vld [vmem:[#allocation8 + $0x540] ss:$8 sps:$4 sm:$0xff]   ;;  %v935_v58 = vmul.f32 %v3897_v41, %v803_v42  ;;  %v3357_v35 = vld [vmem:[#allocation8 + $0x2f0] ss:$8 sps:$4 sm:$0xff]  }
 0x1a7   :  { %2564 = vmatpush1.bf16.msra.mxu0 %v3294_v57  ;;  %2360 = vmatprep.subr.bf16.mxu1 %v3299_v59  ;;  %v3326_v57 = vld [vmem:[#allocation8 + $0x554] ss:$8 sps:$4 sm:$0xff]   ;;  %v672_v45 = vadd.f32 %v3707_v51, %v411_v40  ;;  %v947_v59 = vmul.f32 %v3897_v41, %v815_v43  ;;  %v1052_v51 = vpack.c.bf16 %v1004_v50, %v1004_v50  ;;  %v776_v40 = vld [vmem:[#allocation7 + $0xd0] sm:$0xff] }
 0x1a8   :  { %2565 = vmatprep.subr.bf16.mxu0 %v3302_v1  ;;  %v3416_v53 = vpop.eup %3415  ;;  %v782_v42 = vld [vmem:[#allocation7 + $0x100] sm:$0xff]  ;;  %v788_v50 = vld [vmem:[#allocation7 + $0x130] sm:$0x11] }
 0x1a9   :  { %v718_v0 = vadd.f32 1.0, %v3416_v53  ;;  %v2731_v1 = vmul.f32 -1.442695, %v672_v45  ;;  %v1019_v3 = vpack.c.bf16 %v947_v59, %v935_v58  ;;  %v857_v53 = vunpack.c.h.bf16 %v782_v42  ;;  %v3371_v59 = vld [vmem:[#allocation8 + $0x5e4] ss:$8 sps:$4 sm:$0xff]  }
 0x1aa   :  { %2361 = vmatpush1.bf16.msra.mxu1 %v3297_v4  ;;  %v3330_v4 = vld [vmem:[#allocation8 + $0x560] ss:$8 sps:$4 sm:$0xff]  }
 0x1ab   :  { %2566 = vmatpush1.bf16.msra.mxu0 %v3300_v23  ;;  %2362 = vmatprep.subr.bf16.mxu1 %v3305_v9  ;;  %3417 = vrcp.f32 %v718_v0  ;;  %v3333_v23 = vld [vmem:[#allocation8 + $0x2b0] ss:$8 sps:$4 sm:$0xff]   ;;  %v3341_v9 = vld [vmem:[#allocation8 + $0x2c4] ss:$8 sps:$4 sm:$0xff]  }
 0x1ac   :  { %2342 = vmatmul.mubr.bf16.gmra.mrb[24].mxu1 %v1046_v19  ;;  %2567 = vmatprep.subr.bf16.mxu0 %v3308_v14  ;;  %3419 = vpow2.f32 %v2731_v1  ;;  %v3350_v14 = vld [vmem:[#allocation8 + $0x594] ss:$8 sps:$4 sm:$0xff]   ;;  %v3353_v19 = vld [vmem:[#allocation8 + $0x2e4] ss:$8 sps:$4 sm:$0xff]  }
 0x1ad   :  { %2535 = vmatmul.mubr.bf16.gmra.mrb[16].mxu0 %v1028_v22  ;;  %2382 = vmatprep.mubr.bf16.mxu1 %v1013_v20  ;;  %v3356_v22 = vld [vmem:[#allocation8 + $0x5a4] ss:$8 sps:$4 sm:$0xff]   ;;  %v770_v20 = vld [vmem:[#allocation7 + $0xa0] sm:$0xff]  ;;  %v767_v0 = vld [vmem:[#allocation7 + $0x88] sm:$0xff] }
 0x1ae   :  { %2363 = vmatpush1.bf16.msra.mxu1 %v3303_v21  ;;  %2544 = vmatprep.mubr.bf16.mxu0 %v1041_v56  ;;  %v808_v56 = vunpack.c.l.bf16 %v3857_v39  ;;  %v3365_v39 = vld [vmem:[#allocation8 + $0x5c4] ss:$8 sps:$4 sm:$0xff]  }
 0x1af   :  { %2568 = vmatpush1.bf16.msra.mxu0 %v3306_v25  ;;  %2364 = vmatprep.subr.bf16.mxu1 %v3311_v44  ;;  %v764_v25 = vld [vmem:[#allocation7 + $0x70] sm:$0xff]  ;;  %v773_v1 = vld [vmem:[#allocation7 + $0xb8] sm:$0xff] }
 0x1b0   :  { %2569 = vmatprep.subr.bf16.mxu0 %v3314_v29  ;;  %v3351_v44 = vld [vmem:[#allocation8 + $0x2e0] ss:$8 sps:$4 sm:$0xff]   ;;  %v821_v33 = vunpack.c.h.bf16 %v764_v25 }
 0x1b2   :  { %2365 = vmatpush1.bf16.msra.mxu1 %v3309_v7  ;;  %v3359_v7 = vld [vmem:[#allocation8 + $0x2f4] ss:$8 sps:$4 sm:$0xff]   ;;  %v953_v5 = vmul.f32 %v3864_v46, %v821_v33 }
 0x1b3   :  { %2570 = vmatpush1.bf16.msra.mxu0 %v3312_v31  ;;  %2366 = vmatprep.subr.bf16.mxu1 %v3317_v34  ;;  %v3362_v31 = vld [vmem:[#allocation8 + $0x5b4] ss:$8 sps:$4 sm:$0xff]   ;;  %v833_v34 = vunpack.c.h.bf16 %v770_v20 }
 0x1b4   :  { %2571 = vmatprep.subr.bf16.mxu0 %v3320_v37 }
 0x1b5   :  { %2545 = vmatmul.mubr.bf16.gmra.mrb[20].mxu0 %v1040_v32  ;;  %v3418_v18 = vpop.eup %3417  ;;  %v3363_v32 = vld [vmem:[#allocation8 + $0x5c0] ss:$8 sps:$4 sm:$0xff]  }
 0x1b6   :  { %2367 = vmatpush1.bf16.msra.mxu1 %v3315_v63  ;;  %2554 = vmatprep.mubr.bf16.mxu0 %v1053_v48  ;;  %v3420_v21 = vpop.eup %3419  ;;  %v3907_v27 = vrot.slane %v3418_v18, %v3671_v54  ;;  %v965_v63 = vmul.f32 %v3864_v46, %v833_v34  ;;  %v3368_v48 = vld [vmem:[#allocation8 + $0x5d4] ss:$8 sps:$4 sm:$0xff]  }
 0x1b7   :  { %2572 = vmatpush1.bf16.msra.mxu0 %v3318_v47  ;;  %2368 = vmatprep.subr.bf16.mxu1 %v3323_v55  ;;  %v724_v29 = vadd.f32 1.0, %v3420_v21  ;;  %v820_v47 = vunpack.c.l.bf16 %v764_v25  ;;  %v832_v55 = vunpack.c.l.bf16 %v770_v20  ;;  %v785_v21 = vld [vmem:[#allocation7 + $0x118] sm:$0xff]  ;;  %v868_v25 = vunpack.c.l.bf16 %v788_v50 }
 0x1b8   :  { %2573 = vmatprep.subr.bf16.mxu0 %v3326_v57  ;;  %v928_v12 = vmul.f32 %v3907_v27, %v796_v28  ;;  %v940_v37 = vmul.f32 %v3907_v27, %v808_v56  ;;  %v1025_v30 = vpack.c.bf16 %v965_v63, %v953_v5  ;;  %v845_v57 = vunpack.c.h.bf16 %v776_v40 }
 0x1b9   :  { %3421 = vrcp.f32 %v724_v29  ;;  %v952_v45 = vmul.f32 %v3907_v27, %v820_v47  ;;  %v964_v58 = vmul.f32 %v3907_v27, %v832_v55  ;;  %v826_v28 = vunpack.c.l.bf16 %v767_v0 }
 0x1ba   :  { %2369 = vmatpush1.bf16.msra.mxu1 %v3321_v62  ;;  %v1012_v43 = vpack.c.bf16 %v940_v37, %v928_v12  ;;  %v3366_v62 = vld [vmem:[#allocation8 + $0x5d0] ss:$8 sps:$4 sm:$0xff]   ;;  %v838_v56 = vunpack.c.l.bf16 %v773_v1  ;;  %v862_v5 = vunpack.c.l.bf16 %v785_v21 }
 0x1bb   :  { %2574 = vmatpush1.bf16.msra.mxu0 %v3324_v52  ;;  %2370 = vmatprep.subr.bf16.mxu1 %v3329_v38  ;;  %v977_v52 = vmul.f32 %v3864_v46, %v845_v57  ;;  %v989_v38 = vmul.f32 %v3864_v46, %v857_v53  ;;  %v791_v12 = vld [vmem:[#allocation7 + $0x148] sm:$0x11] }
 0x1bc   :  { %2575 = vmatprep.subr.bf16.mxu0 %v3332_v61  ;;  %v874_v47 = vunpack.c.l.bf16 %v791_v12 }
 0x1bd   :  { %2555 = vmatmul.mubr.bf16.gmra.mrb[24].mxu0 %v1052_v51  ;;  %v844_v51 = vunpack.c.l.bf16 %v776_v40  ;;  %v875_v40 = vunpack.c.h.bf16 %v791_v12 }
 0x1be   :  { %2371 = vmatpush1.bf16.msra.mxu1 %v3327_v2  ;;  %2595 = vmatprep.mubr.bf16.mxu0 %v1019_v3  ;;  %v1024_v2 = vpack.c.bf16 %v964_v58, %v952_v45  ;;  %v3369_v3 = vld [vmem:[#allocation8 + $0x5e0] ss:$8 sps:$4 sm:$0xff]  }
 0x1bf   :  { %2576 = vmatpush1.bf16.msra.mxu0 %v3330_v4  ;;  %2372 = vmatprep.subr.bf16.mxu1 %v3335_v6  ;;  %v856_v4 = vunpack.c.l.bf16 %v782_v42  ;;  %v869_v6 = vunpack.c.h.bf16 %v788_v50 }
 0x1c0   :  { %2577 = vmatprep.subr.bf16.mxu0 %v3338_v26 }
 0x1c2   :  { %2373 = vmatpush1.bf16.msra.mxu1 %v3333_v23  ;;  %v1037_v23 = vpack.c.bf16 %v989_v38, %v977_v52 }
 0x1c3   :  { %2578 = vmatpush1.bf16.msra.mxu0 %v3336_v8  ;;  %2374 = vmatprep.subr.bf16.mxu1 %v3341_v9  ;;  %v3422_v61 = vpop.eup %3421  ;;  %v3374_v8 = vld [vmem:[#allocation8 + $0x5f4] ss:$8 sps:$4 sm:$0xff]   ;;  %v802_v9 = vunpack.c.l.bf16 %v3888_v13 }
 0x1c4   :  { %2579 = vmatprep.subr.bf16.mxu0 %v3344_v10  ;;  %v919_v26 = vrot.slane %v3422_v61, %v3671_v54  ;;  %v814_v10 = vunpack.c.l.bf16 %v3890_v60  ;;  %v779_v60 = vld [vmem:[#allocation7 + $0xe8] sm:$0xff] }
 0x1c6   :  { %2375 = vmatpush1.bf16.msra.mxu1 %v3339_v11  ;;  %v827_v11 = vunpack.c.h.bf16 %v767_v0  ;;  %v934_v18 = vmul.f32 %v919_v26, %v802_v9  ;;  %v946_v54 = vmul.f32 %v919_v26, %v814_v10  ;;  %v970_v33 = vmul.f32 %v919_v26, %v838_v56 }
 0x1c7   :  { %2580 = vmatpush1.bf16.msra.mxu0 %v3342_v15  ;;  %2376 = vmatprep.subr.bf16.mxu1 %v3347_v16  ;;  %v839_v15 = vunpack.c.h.bf16 %v773_v1  ;;  %v3372_v16 = vld [vmem:[#allocation8 + $0x5f0] ss:$8 sps:$4 sm:$0xff]  }
 0x1c8   :  { %2581 = vmatprep.subr.bf16.mxu0 %v3350_v14  ;;  %v976_v14 = vmul.f32 %v3907_v27, %v844_v51  ;;  %v1018_v20 = vpack.c.bf16 %v946_v54, %v934_v18 }
 0x1c9   :  { %v971_v13 = vmul.f32 %v3897_v41, %v839_v15 }
 0x1ca   :  { %2377 = vmatpush1.bf16.msra.mxu1 %v3345_v17  ;;  %v988_v17 = vmul.f32 %v3907_v27, %v856_v4 }
 0x1cb   :  { %2582 = vmatpush1.bf16.msra.mxu0 %v3348_v24  ;;  %2378 = vmatprep.subr.bf16.mxu1 %v3353_v19  ;;  %v1001_v24 = vmul.f32 %v3864_v46, %v869_v6  ;;  %v959_v19 = vmul.f32 %v3897_v41, %v827_v11  ;;  %v1000_v46 = vmul.f32 %v3907_v27, %v868_v25 }
 0x1cc   :  { %2583 = vmatprep.subr.bf16.mxu0 %v3356_v22  ;;  %v1036_v22 = vpack.c.bf16 %v988_v17, %v976_v14  ;;  %v1007_v27 = vmul.f32 %v3897_v41, %v875_v40 }
 0x1cd   :  { %v1031_v29 = vpack.c.bf16 %v971_v13, %v959_v19  ;;  %v1048_v37 = vpack.c.bf16 %v1000_v46, %v1000_v46 }
 0x1ce   :  { %2379 = vmatpush1.bf16.msra.mxu1 %v3351_v44  ;;  %v1049_v44 = vpack.c.bf16 %v1001_v24, %v1001_v24  ;;  %v1055_v55 = vpack.c.bf16 %v1007_v27, %v1007_v27 }
 0x1cf   :  { %2584 = vmatpush1.bf16.msra.mxu0 %v3354_v49  ;;  %2380 = vmatprep.subr.bf16.mxu1 %v3359_v7  ;;  %v851_v49 = vunpack.c.h.bf16 %v779_v60  ;;  %v863_v7 = vunpack.c.h.bf16 %v785_v21 }
 0x1d0   :  { %2585 = vmatprep.subr.bf16.mxu0 %v3362_v31  ;;  %v958_v31 = vmul.f32 %v919_v26, %v826_v28 }
 0x1d1   :  { %v983_v34 = vmul.f32 %v3897_v41, %v851_v49 }
 0x1d2   :  { %2381 = vmatpush1.bf16.msra.mxu1 %v3357_v35  ;;  %v995_v35 = vmul.f32 %v3897_v41, %v863_v7 }
 0x1d3   :  { %2586 = vmatpush1.bf16.msra.mxu0 %v3360_v36  ;;  %v1030_v36 = vpack.c.bf16 %v970_v33, %v958_v31 }
 0x1d4   :  { %2587 = vmatprep.subr.bf16.mxu0 %v3365_v39  ;;  %v850_v39 = vunpack.c.l.bf16 %v779_v60  ;;  %v1043_v63 = vpack.c.bf16 %v995_v35, %v983_v34 }
 0x1d5   :  { %2383 = vmatmul.mubr.bf16.vlgmr.msra.gmra.mrb[12].mxu1 %v1012_v43  ;;  %v994_v43 = vmul.f32 %v919_v26, %v862_v5 }
 0x1d6   :  { %2392 = vmatprep.mubr.bf16.mxu1 %v1025_v30  ;;  %v982_v42 = vmul.f32 %v919_v26, %v850_v39  ;;  %v1006_v30 = vmul.f32 %v919_v26, %v874_v47 }
 0x1d7   :  { %2588 = vmatpush1.bf16.msra.mxu0 %v3363_v32 }
 0x1d8   :  { %2589 = vmatprep.subr.bf16.mxu0 %v3368_v48  ;;  %v1042_v32 = vpack.c.bf16 %v994_v43, %v982_v42  ;;  %v1054_v48 = vpack.c.bf16 %v1006_v30, %v1006_v30 }
 0x1db   :  { %2590 = vmatpush1.bf16.msra.mxu0 %v3366_v62 }
 0x1dc   :  { %2591 = vmatprep.subr.bf16.mxu0 %v3371_v59 }
 0x1dd   :  { %2393 = vmatmul.mubr.bf16.gmra.mrb[16].mxu1 %v1024_v2 }
 0x1de   :  { %2402 = vmatprep.mubr.bf16.mxu1 %v1037_v23 }
 0x1df   :  { %2592 = vmatpush1.bf16.msra.mxu0 %v3369_v3 }
 0x1e0   :  { %2593 = vmatprep.subr.bf16.mxu0 %v3374_v8 }
 0x1e3   :  { %2594 = vmatpush1.bf16.msra.mxu0 %v3372_v16 }
 0x1e5   :  { %2403 = vmatmul.mubr.bf16.gmra.mrb[20].mxu1 %v1036_v22 }
 0x1e6   :  { %2596 = vmatmul.mubr.bf16.vlgmr.msra.gmra.mrb[12].mxu0 %v1018_v20  ;;  %2412 = vmatprep.mubr.bf16.mxu1 %v1049_v44 }
 0x1e7   :  { %2605 = vmatprep.mubr.bf16.mxu0 %v1031_v29 }
 0x1ed   :  { %2413 = vmatmul.mubr.bf16.gmra.mrb[24].mxu1 %v1048_v37 }
 0x1ee   :  { %2606 = vmatmul.mubr.bf16.gmra.mrb[16].mxu0 %v1030_v36 }
 0x1ef   :  { %2615 = vmatprep.mubr.bf16.mxu0 %v1043_v63 }
 0x1f6   :  { %2616 = vmatmul.mubr.bf16.gmra.mrb[20].mxu0 %v1042_v32 }
 0x1f7   :  { %2625 = vmatprep.mubr.bf16.mxu0 %v1055_v55 }
 0x1fe   :  { %2626 = vmatmul.mubr.bf16.gmra.mrb[24].mxu0 %v1054_v48 }
 0x2a8   :  { %v2384_v57 = vpop.f32.mrb[12].mxu1 }
 0x2a9   :  { %v2386_v53 = vpop.f32.mrb[13].mxu1 }
 0x2aa   :  { %v2388_v62 = vpop.f32.mrb[14].mxu1 }
 0x2ab   :  { %v2390_v45 = vpop.f32.mrb[15].mxu1 }
 0x2b0   :  { %v2394_v58 = vpop.f32.mrb[16].mxu1 }
 0x2b1   :  { %v2396_v59 = vpop.f32.mrb[17].mxu1 }
 0x2b2   :  { %v2398_v52 = vpop.f32.mrb[18].mxu1 }
 0x2b3   :  { %v2400_v38 = vpop.f32.mrb[19].mxu1 }
 0x2b8   :  { %v2404_v50 = vpop.f32.mrb[20].mxu1 }
 0x2b9   :  { %v2597_v61 = vpop.f32.mrb[12].mxu0  ;;  %v2406_v0 = vpop.f32.mrb[21].mxu1 }
 0x2ba   :  { %v2925_v41 = vadd.f32 %v2597_v61, %v2384_v57  ;;  %v2599_v1 = vpop.f32.mrb[13].mxu0  ;;  %v2408_v2 = vpop.f32.mrb[22].mxu1 }
 0x2bb   :  { %v2926_v3 = vadd.f32 %v2599_v1, %v2386_v53  ;;  %v2601_v51 = vpop.f32.mrb[14].mxu0  ;;  %v2410_v4 = vpop.f32.mrb[23].mxu1 }
 0x2bc   :  { %2634 = vst [vmem:[#allocation10] sm:$0xff] %v2925_v41  ;;  %v2927_v6 = vadd.f32 %v2601_v51, %v2388_v62  ;;  %v2603_v26 = vpop.f32.mrb[15].mxu0 }
 0x2bd   :  { %2635 = vst [vmem:[#allocation10 + $0x8] sm:$0xff] %v2926_v3  ;;  %v2928_v23 = vadd.f32 %v2603_v26, %v2390_v45 }
 0x2be   :  { %2636 = vst [vmem:[#allocation10 + $0x10] sm:$0xff] %v2927_v6 }
 0x2bf   :  { %2637 = vst [vmem:[#allocation10 + $0x18] sm:$0xff] %v2928_v23 }
 0x2c0   :  { %v2414_v8 = vpop.f32.mrb[24].mxu1 }
 0x2c1   :  { %v2607_v9 = vpop.f32.mrb[16].mxu0  ;;  %v2416_v10 = vpop.f32.mrb[25].mxu1 }
 0x2c2   :  { %v2929_v11 = vadd.f32 %v2607_v9, %v2394_v58  ;;  %v2609_v15 = vpop.f32.mrb[17].mxu0  ;;  %v2418_v16 = vpop.f32.mrb[26].mxu1 }
 0x2c3   :  { %v2930_v14 = vadd.f32 %v2609_v15, %v2396_v59  ;;  %v2611_v17 = vpop.f32.mrb[18].mxu0  ;;  %v2419_v18 = vpop.f32.mrb[27].mxu1 }
 0x2c4   :  { %2638 = vst [vmem:[#allocation10 + $0x20] sm:$0xff] %v2929_v11  ;;  %v2931_v54 = vadd.f32 %v2611_v17, %v2398_v52  ;;  %v2613_v24 = vpop.f32.mrb[19].mxu0 }
 0x2c5   :  { %2639 = vst [vmem:[#allocation10 + $0x28] sm:$0xff] %v2930_v14  ;;  %v2932_v19 = vadd.f32 %v2613_v24, %v2400_v38 }
 0x2c6   :  { %2640 = vst [vmem:[#allocation10 + $0x30] sm:$0xff] %v2931_v54 }
 0x2c7   :  { %2641 = vst [vmem:[#allocation10 + $0x38] sm:$0xff] %v2932_v19 }
 0x2c9   :  { %v2617_v13 = vpop.f32.mrb[20].mxu0 }
 0x2ca   :  { %v2933_v60 = vadd.f32 %v2617_v13, %v2404_v50  ;;  %v2619_v21 = vpop.f32.mrb[21].mxu0 }
 0x2cb   :  { %v2934_v22 = vadd.f32 %v2619_v21, %v2406_v0  ;;  %v2621_v25 = vpop.f32.mrb[22].mxu0 }
 0x2cc   :  { %2642 = vst [vmem:[#allocation10 + $0x40] sm:$0xff] %v2933_v60  ;;  %v2935_v20 = vadd.f32 %v2621_v25, %v2408_v2  ;;  %v2623_v44 = vpop.f32.mrb[23].mxu0 }
 0x2cd   :  { %2643 = vst [vmem:[#allocation10 + $0x48] sm:$0xff] %v2934_v22  ;;  %v2936_v28 = vadd.f32 %v2623_v44, %v2410_v4 }
 0x2ce   :  { %2644 = vst [vmem:[#allocation10 + $0x50] sm:$0xff] %v2935_v20 }
 0x2cf   :  { %2645 = vst [vmem:[#allocation10 + $0x58] sm:$0xff] %v2936_v28 }
 0x2d1   :  { %v2627_v56 = vpop.f32.mrb[24].mxu0 }
 0x2d2   :  { %v2937_v29 = vadd.f32 %v2627_v56, %v2414_v8  ;;  %v2629_v49 = vpop.f32.mrb[25].mxu0 }
 0x2d3   :  { %v2938_v7 = vadd.f32 %v2629_v49, %v2416_v10  ;;  %v2631_v46 = vpop.f32.mrb[26].mxu0 }
 0x2d4   :  { %2646 = vst [vmem:[#allocation10 + $0x60] sm:$0x1] %v2937_v29  ;;  %v2632_v31 = vpop.f32.mrb[27].mxu0 }
 0x2d5   :  { %2647 = vst [vmem:[#allocation10 + $0x68] sm:$0x1] %v2938_v7 }
 0x2d6   :  { %3522 = shalt.err (!%p3519_p8)
}
 0x2d7   :  { %s3523_s22 = scalar_lea.hbm %s3948_s5, 1792 }
 0x2d8   :  { %p3524_p9 = scmp.ne.s32.totalorder %s3948_s5, %s3523_s22  ;;  %p3527_p10 = scmp.lt.u32.totalorder %s3523_s22, %s3948_s5 }
 0x2da   :  { %p3529_p11 = pnand %p3527_p10, %p3524_p9 }
 0x2dc   :  { %3532 = shalt.err (!%p3529_p11)
}
 0x2dd   :  { %s3551_s27 = smov 256   ;;  %s3552_s28 = smov 16  }
 0x2de   :  { %2659 = dma.vmem_to_hbm [thread:$0]  %s2654_s17, 1792, %s3948_s5, [#allocation4], %s3551_s27, %s3551_s27, %s3552_s28  }
 0x2df   :  { %3539 = dma.done.wait [#allocation4], 1792  }
 0x2e0   :  { %3540 = vsyncadd [#allocation4], 4294965504 }
 0x2e1   :  { %2663 = vsyncpa [#allocation3], 1 }
 0x2e2   :  { %2664 = vsyncpa [#allocation6], 1 }
 0x2e3   :  { %2665 = vsyncpa [#allocation9], 1 }
 0x2e4   :  { %2666 = vsyncpa [#allocation4], 1 }

</bundles_post_ra>
